<compile_context>
chip_gen: v6e
topology: v6e:2x2x1
jax: 0.10.0
libtpu: 0.0.40
codegen_flags: <defaults>
</compile_context>

<pallas_src>
import functools

import jax
import jax.numpy as jnp
from jax import lax
from jax.experimental import pallas as pl
from jax.experimental.pallas import tpu as pltpu

KSIZE = 3
PAD = 1


def _spatial_attn_kernel(x_ref, w_ref, o_ref, sum_s, max_s, avg_p, max_p, *,
                         height, width):
    # x_ref : (1, ct, H*W)   VMEM   lane-dense unpadded input chunk
    # w_ref : (18,)          SMEM   conv weight, avg-half pre-scaled by 1/C
    # o_ref : (1, 1, H*W)    VMEM   sigmoid(conv([avg, max])), lane-dense
    # sum_s, max_s : (1, H*W)       f32 running channel sum / max
    # avg_p, max_p : (H+2, W+2)     f32 zero-padded maps for the 3x3 conv
    c = pl.program_id(1)
    nc = pl.num_programs(1)
    ct = x_ref.shape[1]
    H, W = height, width

    # ---- chunk reduction: one pass, each channel row read from VMEM once ----
    def load_row(i):
        return x_ref[0, i, :].astype(jnp.float32)           # (H*W,) lane-dense

    row0 = load_row(0)

    def body(i, carry):
        s, m = carry
        xi = load_row(i)
        return s + xi, jnp.maximum(m, xi)

    unroll = True if ct <= 16 else 4
    chunk_sum, chunk_max = lax.fori_loop(1, ct, body, (row0, row0),
                                         unroll=unroll)

    # ---- accumulate across channel chunks (scratch persists across grid) ----
    @pl.when(c == 0)
    def _():                        # direct write: no init + RMW pass
        sum_s[0] = chunk_sum
        max_s[0] = chunk_max

    @pl.when(c > 0)
    def _():
        sum_s[0] = sum_s[0] + chunk_sum
        max_s[0] = jnp.maximum(max_s[0], chunk_max)

    # ---- epilogue: 3x3 conv (zero padded) + sigmoid, once per batch elem ----
    @pl.when(c == nc - 1)
    def _():
        # The 1-pixel border is the conv's zero padding.  Scratch persists
        # across grid steps and the batch axis is 'parallel' (no cross-step
        # ordering guarantee), so re-zero the tiny (H+2, W+2) maps every
        # epilogue, then fill the interiors row by row from the lane-dense
        # accumulators (runs once per batch element, negligible vs streaming).
        avg_p[...] = jnp.zeros_like(avg_p)
        max_p[...] = jnp.zeros_like(max_p)
        for i in range(H):
            avg_p[PAD + i, PAD:PAD + W] = sum_s[0, i * W:(i + 1) * W]
            max_p[PAD + i, PAD:PAD + W] = max_s[0, i * W:(i + 1) * W]

        acc = jnp.zeros((H, W), jnp.float32)
        for di in range(KSIZE):                 # 18 taps, once per batch elem
            for dj in range(KSIZE):
                w_avg = w_ref[(0 * KSIZE + di) * KSIZE + dj]
                w_max = w_ref[(1 * KSIZE + di) * KSIZE + dj]
                acc = acc + w_avg * avg_p[di:di + H, dj:dj + W]
                acc = acc + w_max * max_p[di:di + H, dj:dj + W]

        sig = jax.nn.sigmoid(acc).astype(o_ref.dtype)        # (H, W)
        for i in range(H):                       # lane-dense output rows
            o_ref[0, 0, i * W:(i + 1) * W] = sig[i]


def spatial_attention(x, weight):
    """x: (B, C, H, W); weight: (1, 2, 3, 3), no bias -> (B, 1, H, W)."""
    B, C, H, W = x.shape
    HW = H * W
    Hp, Wp = H + 2 * PAD, W + 2 * PAD
    itemsize = x.dtype.itemsize

    x_flat = x.reshape(B, C, HW)          # free reshape; lane-dense rows

    # Channel-chunk size: largest divisor of C whose *padded* VMEM footprint
    # fits the per-buffer budget.  ct | C -> no partial chunks, no masking.
    sub = {4: 8, 2: 16, 1: 32}.get(itemsize, 8)     # sublane packing per dtype
    lanes = -(-HW // 128) * 128                     # lane-padded row length

    def block_bytes(ch):
        return (-(-ch // sub) * sub) * lanes * itemsize

    block_budget = 12 * 1024 * 1024       # per buffer; x2 for double-buffering
    divisors = [d for d in range(1, C + 1) if C % d == 0]
    aligned = [d for d in divisors
               if (d == C or d % sub == 0) and block_bytes(d) <= block_budget]
    if aligned:
        ct = max(aligned)
    else:
        fitting = [d for d in divisors if block_bytes(d) <= block_budget]
        ct = max(fitting) if fitting else C
    nc = C // ct

    # Scoped-VMEM request: 2x input block (double buffer) + output blocks +
    # scratch + headroom, clamped so it also fits v7x's 64 MiB physical VMEM
    # and never drops below v5e's 16 MiB scoped default.
    pad_map_bytes = (-(-Hp // 8) * 8) * (-(-Wp // 128) * 128) * 4
    acc_bytes = 8 * lanes * 4
    need = (2 * block_bytes(ct) + 2 * 8 * lanes * itemsize
            + 2 * acc_bytes + 2 * pad_map_bytes + (1 << 20))
    vmem_limit = int(min(max(need, 16 * 1024 * 1024), 30 * 1024 * 1024))

    # Fold the 1/C of the channel mean into the avg-half of the conv weight so
    # the kernel accumulates a plain channel sum.
    w = weight.astype(jnp.float32)
    w_flat = jnp.concatenate(
        [w[0, 0].reshape(-1) / jnp.float32(C), w[0, 1].reshape(-1)])   # (18,)

    kernel = functools.partial(_spatial_attn_kernel, height=H, width=W)

    # TODO(synk): for v7x single-batch inference, add a second parallel axis
    # (H row bands with a 1-row halo) so both TensorCores stay busy when B < 2.
    out_flat = pl.pallas_call(
        kernel,
        out_shape=jax.ShapeDtypeStruct((B, 1, HW), x.dtype),
        grid_spec=pltpu.PrefetchScalarGridSpec(
            num_scalar_prefetch=0,
            grid=(B, nc),                     # channel (reduction) axis last
            in_specs=[
                pl.BlockSpec((1, ct, HW), lambda b, c: (b, c, 0)),
                pl.BlockSpec(memory_space=pltpu.MemorySpace.SMEM),
            ],
            out_specs=pl.BlockSpec((1, 1, HW), lambda b, c: (b, 0, 0)),
            scratch_shapes=[
                pltpu.VMEM((1, HW), jnp.float32),     # running channel sum
                pltpu.VMEM((1, HW), jnp.float32),     # running channel max
                pltpu.VMEM((Hp, Wp), jnp.float32),    # zero-padded avg map
                pltpu.VMEM((Hp, Wp), jnp.float32),    # zero-padded max map
            ],
        ),
        compiler_params=pltpu.CompilerParams(
            dimension_semantics=("parallel", "arbitrary"),
            vmem_limit_bytes=vmem_limit,
        ),
    )(x_flat, w_flat)

    return out_flat.reshape(B, 1, H, W)


def _reference(x, weight):
    avg = jnp.mean(x, axis=1, keepdims=True)
    mx = jnp.max(x, axis=1, keepdims=True)
    feat = jnp.concatenate([avg, mx], axis=1)             # (B, 2, H, W)
    y = lax.conv_general_dilated(
        feat, weight, window_strides=(1, 1),
        padding=((PAD, PAD), (PAD, PAD)),
        dimension_numbers=("NCHW", "OIHW", "NCHW"))
    return jax.nn.sigmoid(y)


if __name__ == "__main__":
    key = jax.random.PRNGKey(0)
    kx, kw = jax.random.split(key)

    B, C, H, W = 2, 4, 16, 16
    x = jax.random.normal(kx, (B, C, H, W), dtype=jnp.float32)

    # Deterministic Conv2d(2, 1, 3, bias=False)-style init: U(-1/sqrt(fan_in), +).
    fan_in = 2 * KSIZE * KSIZE
    bound = 1.0 / (fan_in ** 0.5)
    weight = jax.random.uniform(
        kw, (1, 2, KSIZE, KSIZE), dtype=jnp.float32, minval=-bound, maxval=bound)

    out = spatial_attention(x, weight)
    out = jax.block_until_ready(out)

    ref = _reference(x, weight)
    assert out.shape == (B, 1, H, W)
    assert jnp.allclose(out, ref, atol=1e-5, rtol=1e-5)
    print("KERNEL_OK")
</pallas_src>

<mosaic_0001>
module attributes {stable_mosaic.version = 11 : i64} {
  func.func @_spatial_attn_kernel(%arg0: i32, %arg1: i32, %arg2: memref<1x4x256xf32, #tpu.memory_space<vmem>>, %arg3: memref<18xf32, #tpu.memory_space<smem>>, %arg4: memref<1x1x256xf32, #tpu.memory_space<vmem>>, %arg5: memref<1x256xf32, #tpu.memory_space<vmem>>, %arg6: memref<1x256xf32, #tpu.memory_space<vmem>>, %arg7: memref<18x18xf32, #tpu.memory_space<vmem>>, %arg8: memref<18x18xf32, #tpu.memory_space<vmem>>) attributes {dimension_semantics = [#tpu.dimension_semantics<parallel>, #tpu.dimension_semantics<arbitrary>], iteration_bounds = array<i64: 2, 1>, scalar_prefetch = 0 : i64, scratch_operands = 4 : i64, tpu.core_type = #tpu.core_type<tc>, window_params = [{transform_indices = @transform_0, window_bounds = array<i64: 1, 4, 256>}, {transform_indices = @transform_1, window_bounds = array<i64: 18>}, {transform_indices = @transform_2, window_bounds = array<i64: 1, 1, 256>}]} {
    %c0 = arith.constant 0 : index
    %c0_0 = arith.constant 0 : index
    %c0_1 = arith.constant 0 : index
    %0 = vector.load %arg2[%c0, %c0_0, %c0_1] : memref<1x4x256xf32, #tpu.memory_space<vmem>>, vector<1x1x256xf32>
    %1 = vector.shape_cast %0 : vector<1x1x256xf32> to vector<256xf32>
    %c1_i32 = arith.constant 1 : i32
    %c0_2 = arith.constant 0 : index
    %2 = arith.index_cast %c1_i32 : i32 to index
    %c0_3 = arith.constant 0 : index
    %3 = vector.load %arg2[%c0_2, %2, %c0_3] : memref<1x4x256xf32, #tpu.memory_space<vmem>>, vector<1x1x256xf32>
    %4 = vector.shape_cast %3 : vector<1x1x256xf32> to vector<256xf32>
    %5 = arith.addf %1, %4 : vector<256xf32>
    %6 = arith.maximumf %1, %4 : vector<256xf32>
    %c2_i32 = arith.constant 2 : i32
    %c0_4 = arith.constant 0 : index
    %7 = arith.index_cast %c2_i32 : i32 to index
    %c0_5 = arith.constant 0 : index
    %8 = vector.load %arg2[%c0_4, %7, %c0_5] : memref<1x4x256xf32, #tpu.memory_space<vmem>>, vector<1x1x256xf32>
    %9 = vector.shape_cast %8 : vector<1x1x256xf32> to vector<256xf32>
    %10 = arith.addf %5, %9 : vector<256xf32>
    %11 = arith.maximumf %6, %9 : vector<256xf32>
    %c3_i32 = arith.constant 3 : i32
    %c0_6 = arith.constant 0 : index
    %12 = arith.index_cast %c3_i32 : i32 to index
    %c0_7 = arith.constant 0 : index
    %13 = vector.load %arg2[%c0_6, %12, %c0_7] : memref<1x4x256xf32, #tpu.memory_space<vmem>>, vector<1x1x256xf32>
    %14 = vector.shape_cast %13 : vector<1x1x256xf32> to vector<256xf32>
    %15 = arith.addf %10, %14 : vector<256xf32>
    %16 = arith.maximumf %11, %14 : vector<256xf32>
    %c3_i32_8 = arith.constant 3 : i32
    %c0_i32 = arith.constant 0 : i32
    %17 = arith.cmpi eq, %arg1, %c0_i32 : i32
    %18 = arith.extui %17 : i1 to i32
    %c0_i32_9 = arith.constant 0 : i32
    %19 = arith.cmpi ne, %18, %c0_i32_9 : i32
    scf.if %19 {
      %c0_14 = arith.constant 0 : index
      %c0_15 = arith.constant 0 : index
      %26 = vector.load %arg5[%c0_14, %c0_15] : memref<1x256xf32, #tpu.memory_space<vmem>>, vector<1x256xf32>
      %27 = vector.shape_cast %26 : vector<1x256xf32> to vector<256xf32>
      %28 = vector.shape_cast %15 : vector<256xf32> to vector<1x256xf32>
      tpu.vector_store %arg5[%c0_14, %c0_15], %28 {strides = array<i32>} : memref<1x256xf32, #tpu.memory_space<vmem>>, vector<1x256xf32>,
      %c0_16 = arith.constant 0 : index
      %c0_17 = arith.constant 0 : index
      %29 = vector.load %arg6[%c0_16, %c0_17] : memref<1x256xf32, #tpu.memory_space<vmem>>, vector<1x256xf32>
      %30 = vector.shape_cast %29 : vector<1x256xf32> to vector<256xf32>
      %31 = vector.shape_cast %16 : vector<256xf32> to vector<1x256xf32>
      tpu.vector_store %arg6[%c0_16, %c0_17], %31 {strides = array<i32>} : memref<1x256xf32, #tpu.memory_space<vmem>>, vector<1x256xf32>,
    } else {
    }
    %c0_i32_10 = arith.constant 0 : i32
    %20 = arith.cmpi sgt, %arg1, %c0_i32_10 : i32
    %21 = arith.extui %20 : i1 to i32
    %c0_i32_11 = arith.constant 0 : i32
    %22 = arith.cmpi ne, %21, %c0_i32_11 : i32
    scf.if %22 {
      %c0_14 = arith.constant 0 : index
      %c0_15 = arith.constant 0 : index
      %26 = vector.load %arg5[%c0_14, %c0_15] : memref<1x256xf32, #tpu.memory_space<vmem>>, vector<1x256xf32>
      %27 = vector.shape_cast %26 : vector<1x256xf32> to vector<256xf32>
      %28 = arith.addf %27, %15 : vector<256xf32>
      %c0_16 = arith.constant 0 : index
      %c0_17 = arith.constant 0 : index
      %29 = vector.load %arg5[%c0_16, %c0_17] : memref<1x256xf32, #tpu.memory_space<vmem>>, vector<1x256xf32>
      %30 = vector.shape_cast %29 : vector<1x256xf32> to vector<256xf32>
      %31 = vector.shape_cast %28 : vector<256xf32> to vector<1x256xf32>
      tpu.vector_store %arg5[%c0_16, %c0_17], %31 {strides = array<i32>} : memref<1x256xf32, #tpu.memory_space<vmem>>, vector<1x256xf32>,
      %c0_18 = arith.constant 0 : index
      %c0_19 = arith.constant 0 : index
      %32 = vector.load %arg6[%c0_18, %c0_19] : memref<1x256xf32, #tpu.memory_space<vmem>>, vector<1x256xf32>
      %33 = vector.shape_cast %32 : vector<1x256xf32> to vector<256xf32>
      %34 = arith.maximumf %33, %16 : vector<256xf32>
      %c0_20 = arith.constant 0 : index
      %c0_21 = arith.constant 0 : index
      %35 = vector.load %arg6[%c0_20, %c0_21] : memref<1x256xf32, #tpu.memory_space<vmem>>, vector<1x256xf32>
      %36 = vector.shape_cast %35 : vector<1x256xf32> to vector<256xf32>
      %37 = vector.shape_cast %34 : vector<256xf32> to vector<1x256xf32>
      tpu.vector_store %arg6[%c0_20, %c0_21], %37 {strides = array<i32>} : memref<1x256xf32, #tpu.memory_space<vmem>>, vector<1x256xf32>,
    } else {
    }
    %c0_i32_12 = arith.constant 0 : i32
    %23 = arith.cmpi eq, %arg1, %c0_i32_12 : i32
    %24 = arith.extui %23 : i1 to i32
    %c0_i32_13 = arith.constant 0 : i32
    %25 = arith.cmpi ne, %24, %c0_i32_13 : i32
    scf.if %25 {
      %cst = arith.constant 0.000000e+00 : f32
      %26 = vector.broadcast %cst : f32 to vector<18x18xf32>
      %c0_14 = arith.constant 0 : index
      %c0_15 = arith.constant 0 : index
      %27 = vector.load %arg7[%c0_14, %c0_15] : memref<18x18xf32, #tpu.memory_space<vmem>>, vector<18x18xf32>
      tpu.vector_store %arg7[%c0_14, %c0_15], %26 {strides = array<i32>} : memref<18x18xf32, #tpu.memory_space<vmem>>, vector<18x18xf32>,
      %cst_16 = arith.constant 0.000000e+00 : f32
      %28 = vector.broadcast %cst_16 : f32 to vector<18x18xf32>
      %c0_17 = arith.constant 0 : index
      %c0_18 = arith.constant 0 : index
      %29 = vector.load %arg8[%c0_17, %c0_18] : memref<18x18xf32, #tpu.memory_space<vmem>>, vector<18x18xf32>
      tpu.vector_store %arg8[%c0_17, %c0_18], %28 {strides = array<i32>} : memref<18x18xf32, #tpu.memory_space<vmem>>, vector<18x18xf32>,
      %c0_19 = arith.constant 0 : index
      %c0_20 = arith.constant 0 : index
      %30 = vector.load %arg5[%c0_19, %c0_20] : memref<1x256xf32, #tpu.memory_space<vmem>>, vector<1x16xf32>
      %31 = vector.shape_cast %30 : vector<1x16xf32> to vector<16xf32>
      %c1 = arith.constant 1 : index
      %c1_21 = arith.constant 1 : index
      %32 = vector.load %arg7[%c1, %c1_21] : memref<18x18xf32, #tpu.memory_space<vmem>>, vector<1x16xf32>
      %33 = vector.shape_cast %32 : vector<1x16xf32> to vector<16xf32>
      %34 = vector.shape_cast %31 : vector<16xf32> to vector<1x16xf32>
      tpu.vector_store %arg7[%c1, %c1_21], %34 {strides = array<i32>} : memref<18x18xf32, #tpu.memory_space<vmem>>, vector<1x16xf32>,
      %c0_22 = arith.constant 0 : index
      %c0_23 = arith.constant 0 : index
      %35 = vector.load %arg6[%c0_22, %c0_23] : memref<1x256xf32, #tpu.memory_space<vmem>>, vector<1x16xf32>
      %36 = vector.shape_cast %35 : vector<1x16xf32> to vector<16xf32>
      %c1_24 = arith.constant 1 : index
      %c1_25 = arith.constant 1 : index
      %37 = vector.load %arg8[%c1_24, %c1_25] : memref<18x18xf32, #tpu.memory_space<vmem>>, vector<1x16xf32>
      %38 = vector.shape_cast %37 : vector<1x16xf32> to vector<16xf32>
      %39 = vector.shape_cast %36 : vector<16xf32> to vector<1x16xf32>
      tpu.vector_store %arg8[%c1_24, %c1_25], %39 {strides = array<i32>} : memref<18x18xf32, #tpu.memory_space<vmem>>, vector<1x16xf32>,
      %c0_26 = arith.constant 0 : index
      %c16 = arith.constant 16 : index
      %40 = vector.load %arg5[%c0_26, %c16] : memref<1x256xf32, #tpu.memory_space<vmem>>, vector<1x16xf32>
      %41 = vector.shape_cast %40 : vector<1x16xf32> to vector<16xf32>
      %c2 = arith.constant 2 : index
      %c1_27 = arith.constant 1 : index
      %42 = vector.load %arg7[%c2, %c1_27] : memref<18x18xf32, #tpu.memory_space<vmem>>, vector<1x16xf32>
      %43 = vector.shape_cast %42 : vector<1x16xf32> to vector<16xf32>
      %44 = vector.shape_cast %41 : vector<16xf32> to vector<1x16xf32>
      tpu.vector_store %arg7[%c2, %c1_27], %44 {strides = array<i32>} : memref<18x18xf32, #tpu.memory_space<vmem>>, vector<1x16xf32>,
      %c0_28 = arith.constant 0 : index
      %c16_29 = arith.constant 16 : index
      %45 = vector.load %arg6[%c0_28, %c16_29] : memref<1x256xf32, #tpu.memory_space<vmem>>, vector<1x16xf32>
      %46 = vector.shape_cast %45 : vector<1x16xf32> to vector<16xf32>
      %c2_30 = arith.constant 2 : index
      %c1_31 = arith.constant 1 : index
      %47 = vector.load %arg8[%c2_30, %c1_31] : memref<18x18xf32, #tpu.memory_space<vmem>>, vector<1x16xf32>
      %48 = vector.shape_cast %47 : vector<1x16xf32> to vector<16xf32>
      %49 = vector.shape_cast %46 : vector<16xf32> to vector<1x16xf32>
      tpu.vector_store %arg8[%c2_30, %c1_31], %49 {strides = array<i32>} : memref<18x18xf32, #tpu.memory_space<vmem>>, vector<1x16xf32>,
      %c0_32 = arith.constant 0 : index
      %c32 = arith.constant 32 : index
      %50 = vector.load %arg5[%c0_32, %c32] : memref<1x256xf32, #tpu.memory_space<vmem>>, vector<1x16xf32>
      %51 = vector.shape_cast %50 : vector<1x16xf32> to vector<16xf32>
      %c3 = arith.constant 3 : index
      %c1_33 = arith.constant 1 : index
      %52 = vector.load %arg7[%c3, %c1_33] : memref<18x18xf32, #tpu.memory_space<vmem>>, vector<1x16xf32>
      %53 = vector.shape_cast %52 : vector<1x16xf32> to vector<16xf32>
      %54 = vector.shape_cast %51 : vector<16xf32> to vector<1x16xf32>
      tpu.vector_store %arg7[%c3, %c1_33], %54 {strides = array<i32>} : memref<18x18xf32, #tpu.memory_space<vmem>>, vector<1x16xf32>,
      %c0_34 = arith.constant 0 : index
      %c32_35 = arith.constant 32 : index
      %55 = vector.load %arg6[%c0_34, %c32_35] : memref<1x256xf32, #tpu.memory_space<vmem>>, vector<1x16xf32>
      %56 = vector.shape_cast %55 : vector<1x16xf32> to vector<16xf32>
      %c3_36 = arith.constant 3 : index
      %c1_37 = arith.constant 1 : index
      %57 = vector.load %arg8[%c3_36, %c1_37] : memref<18x18xf32, #tpu.memory_space<vmem>>, vector<1x16xf32>
      %58 = vector.shape_cast %57 : vector<1x16xf32> to vector<16xf32>
      %59 = vector.shape_cast %56 : vector<16xf32> to vector<1x16xf32>
      tpu.vector_store %arg8[%c3_36, %c1_37], %59 {strides = array<i32>} : memref<18x18xf32, #tpu.memory_space<vmem>>, vector<1x16xf32>,
      %c0_38 = arith.constant 0 : index
      %c48 = arith.constant 48 : index
      %60 = vector.load %arg5[%c0_38, %c48] : memref<1x256xf32, #tpu.memory_space<vmem>>, vector<1x16xf32>
      %61 = vector.shape_cast %60 : vector<1x16xf32> to vector<16xf32>
      %c4 = arith.constant 4 : index
      %c1_39 = arith.constant 1 : index
      %62 = vector.load %arg7[%c4, %c1_39] : memref<18x18xf32, #tpu.memory_space<vmem>>, vector<1x16xf32>
      %63 = vector.shape_cast %62 : vector<1x16xf32> to vector<16xf32>
      %64 = vector.shape_cast %61 : vector<16xf32> to vector<1x16xf32>
      tpu.vector_store %arg7[%c4, %c1_39], %64 {strides = array<i32>} : memref<18x18xf32, #tpu.memory_space<vmem>>, vector<1x16xf32>,
      %c0_40 = arith.constant 0 : index
      %c48_41 = arith.constant 48 : index
      %65 = vector.load %arg6[%c0_40, %c48_41] : memref<1x256xf32, #tpu.memory_space<vmem>>, vector<1x16xf32>
      %66 = vector.shape_cast %65 : vector<1x16xf32> to vector<16xf32>
      %c4_42 = arith.constant 4 : index
      %c1_43 = arith.constant 1 : index
      %67 = vector.load %arg8[%c4_42, %c1_43] : memref<18x18xf32, #tpu.memory_space<vmem>>, vector<1x16xf32>
      %68 = vector.shape_cast %67 : vector<1x16xf32> to vector<16xf32>
      %69 = vector.shape_cast %66 : vector<16xf32> to vector<1x16xf32>
      tpu.vector_store %arg8[%c4_42, %c1_43], %69 {strides = array<i32>} : memref<18x18xf32, #tpu.memory_space<vmem>>, vector<1x16xf32>,
      %c0_44 = arith.constant 0 : index
      %c64 = arith.constant 64 : index
      %70 = vector.load %arg5[%c0_44, %c64] : memref<1x256xf32, #tpu.memory_space<vmem>>, vector<1x16xf32>
      %71 = vector.shape_cast %70 : vector<1x16xf32> to vector<16xf32>
      %c5 = arith.constant 5 : index
      %c1_45 = arith.constant 1 : index
      %72 = vector.load %arg7[%c5, %c1_45] : memref<18x18xf32, #tpu.memory_space<vmem>>, vector<1x16xf32>
      %73 = vector.shape_cast %72 : vector<1x16xf32> to vector<16xf32>
      %74 = vector.shape_cast %71 : vector<16xf32> to vector<1x16xf32>
      tpu.vector_store %arg7[%c5, %c1_45], %74 {strides = array<i32>} : memref<18x18xf32, #tpu.memory_space<vmem>>, vector<1x16xf32>,
      %c0_46 = arith.constant 0 : index
      %c64_47 = arith.constant 64 : index
      %75 = vector.load %arg6[%c0_46, %c64_47] : memref<1x256xf32, #tpu.memory_space<vmem>>, vector<1x16xf32>
      %76 = vector.shape_cast %75 : vector<1x16xf32> to vector<16xf32>
      %c5_48 = arith.constant 5 : index
      %c1_49 = arith.constant 1 : index
      %77 = vector.load %arg8[%c5_48, %c1_49] : memref<18x18xf32, #tpu.memory_space<vmem>>, vector<1x16xf32>
      %78 = vector.shape_cast %77 : vector<1x16xf32> to vector<16xf32>
      %79 = vector.shape_cast %76 : vector<16xf32> to vector<1x16xf32>
      tpu.vector_store %arg8[%c5_48, %c1_49], %79 {strides = array<i32>} : memref<18x18xf32, #tpu.memory_space<vmem>>, vector<1x16xf32>,
      %c0_50 = arith.constant 0 : index
      %c80 = arith.constant 80 : index
      %80 = vector.load %arg5[%c0_50, %c80] : memref<1x256xf32, #tpu.memory_space<vmem>>, vector<1x16xf32>
      %81 = vector.shape_cast %80 : vector<1x16xf32> to vector<16xf32>
      %c6 = arith.constant 6 : index
      %c1_51 = arith.constant 1 : index
      %82 = vector.load %arg7[%c6, %c1_51] : memref<18x18xf32, #tpu.memory_space<vmem>>, vector<1x16xf32>
      %83 = vector.shape_cast %82 : vector<1x16xf32> to vector<16xf32>
      %84 = vector.shape_cast %81 : vector<16xf32> to vector<1x16xf32>
      tpu.vector_store %arg7[%c6, %c1_51], %84 {strides = array<i32>} : memref<18x18xf32, #tpu.memory_space<vmem>>, vector<1x16xf32>,
      %c0_52 = arith.constant 0 : index
      %c80_53 = arith.constant 80 : index
      %85 = vector.load %arg6[%c0_52, %c80_53] : memref<1x256xf32, #tpu.memory_space<vmem>>, vector<1x16xf32>
      %86 = vector.shape_cast %85 : vector<1x16xf32> to vector<16xf32>
      %c6_54 = arith.constant 6 : index
      %c1_55 = arith.constant 1 : index
      %87 = vector.load %arg8[%c6_54, %c1_55] : memref<18x18xf32, #tpu.memory_space<vmem>>, vector<1x16xf32>
      %88 = vector.shape_cast %87 : vector<1x16xf32> to vector<16xf32>
      %89 = vector.shape_cast %86 : vector<16xf32> to vector<1x16xf32>
      tpu.vector_store %arg8[%c6_54, %c1_55], %89 {strides = array<i32>} : memref<18x18xf32, #tpu.memory_space<vmem>>, vector<1x16xf32>,
      %c0_56 = arith.constant 0 : index
      %c96 = arith.constant 96 : index
      %90 = vector.load %arg5[%c0_56, %c96] : memref<1x256xf32, #tpu.memory_space<vmem>>, vector<1x16xf32>
      %91 = vector.shape_cast %90 : vector<1x16xf32> to vector<16xf32>
      %c7 = arith.constant 7 : index
      %c1_57 = arith.constant 1 : index
      %92 = vector.load %arg7[%c7, %c1_57] : memref<18x18xf32, #tpu.memory_space<vmem>>, vector<1x16xf32>
      %93 = vector.shape_cast %92 : vector<1x16xf32> to vector<16xf32>
      %94 = vector.shape_cast %91 : vector<16xf32> to vector<1x16xf32>
      tpu.vector_store %arg7[%c7, %c1_57], %94 {strides = array<i32>} : memref<18x18xf32, #tpu.memory_space<vmem>>, vector<1x16xf32>,
      %c0_58 = arith.constant 0 : index
      %c96_59 = arith.constant 96 : index
      %95 = vector.load %arg6[%c0_58, %c96_59] : memref<1x256xf32, #tpu.memory_space<vmem>>, vector<1x16xf32>
      %96 = vector.shape_cast %95 : vector<1x16xf32> to vector<16xf32>
      %c7_60 = arith.constant 7 : index
      %c1_61 = arith.constant 1 : index
      %97 = vector.load %arg8[%c7_60, %c1_61] : memref<18x18xf32, #tpu.memory_space<vmem>>, vector<1x16xf32>
      %98 = vector.shape_cast %97 : vector<1x16xf32> to vector<16xf32>
      %99 = vector.shape_cast %96 : vector<16xf32> to vector<1x16xf32>
      tpu.vector_store %arg8[%c7_60, %c1_61], %99 {strides = array<i32>} : memref<18x18xf32, #tpu.memory_space<vmem>>, vector<1x16xf32>,
      %c0_62 = arith.constant 0 : index
      %c112 = arith.constant 112 : index
      %100 = vector.load %arg5[%c0_62, %c112] : memref<1x256xf32, #tpu.memory_space<vmem>>, vector<1x16xf32>
      %101 = vector.shape_cast %100 : vector<1x16xf32> to vector<16xf32>
      %c8 = arith.constant 8 : index
      %c1_63 = arith.constant 1 : index
      %102 = vector.load %arg7[%c8, %c1_63] : memref<18x18xf32, #tpu.memory_space<vmem>>, vector<1x16xf32>
      %103 = vector.shape_cast %102 : vector<1x16xf32> to vector<16xf32>
      %104 = vector.shape_cast %101 : vector<16xf32> to vector<1x16xf32>
      tpu.vector_store %arg7[%c8, %c1_63], %104 {strides = array<i32>} : memref<18x18xf32, #tpu.memory_space<vmem>>, vector<1x16xf32>,
      %c0_64 = arith.constant 0 : index
      %c112_65 = arith.constant 112 : index
      %105 = vector.load %arg6[%c0_64, %c112_65] : memref<1x256xf32, #tpu.memory_space<vmem>>, vector<1x16xf32>
      %106 = vector.shape_cast %105 : vector<1x16xf32> to vector<16xf32>
      %c8_66 = arith.constant 8 : index
      %c1_67 = arith.constant 1 : index
      %107 = vector.load %arg8[%c8_66, %c1_67] : memref<18x18xf32, #tpu.memory_space<vmem>>, vector<1x16xf32>
      %108 = vector.shape_cast %107 : vector<1x16xf32> to vector<16xf32>
      %109 = vector.shape_cast %106 : vector<16xf32> to vector<1x16xf32>
      tpu.vector_store %arg8[%c8_66, %c1_67], %109 {strides = array<i32>} : memref<18x18xf32, #tpu.memory_space<vmem>>, vector<1x16xf32>,
      %c0_68 = arith.constant 0 : index
      %c128 = arith.constant 128 : index
      %110 = vector.load %arg5[%c0_68, %c128] : memref<1x256xf32, #tpu.memory_space<vmem>>, vector<1x16xf32>
      %111 = vector.shape_cast %110 : vector<1x16xf32> to vector<16xf32>
      %c9 = arith.constant 9 : index
      %c1_69 = arith.constant 1 : index
      %112 = vector.load %arg7[%c9, %c1_69] : memref<18x18xf32, #tpu.memory_space<vmem>>, vector<1x16xf32>
      %113 = vector.shape_cast %112 : vector<1x16xf32> to vector<16xf32>
      %114 = vector.shape_cast %111 : vector<16xf32> to vector<1x16xf32>
      tpu.vector_store %arg7[%c9, %c1_69], %114 {strides = array<i32>} : memref<18x18xf32, #tpu.memory_space<vmem>>, vector<1x16xf32>,
      %c0_70 = arith.constant 0 : index
      %c128_71 = arith.constant 128 : index
      %115 = vector.load %arg6[%c0_70, %c128_71] : memref<1x256xf32, #tpu.memory_space<vmem>>, vector<1x16xf32>
      %116 = vector.shape_cast %115 : vector<1x16xf32> to vector<16xf32>
      %c9_72 = arith.constant 9 : index
      %c1_73 = arith.constant 1 : index
      %117 = vector.load %arg8[%c9_72, %c1_73] : memref<18x18xf32, #tpu.memory_space<vmem>>, vector<1x16xf32>
      %118 = vector.shape_cast %117 : vector<1x16xf32> to vector<16xf32>
      %119 = vector.shape_cast %116 : vector<16xf32> to vector<1x16xf32>
      tpu.vector_store %arg8[%c9_72, %c1_73], %119 {strides = array<i32>} : memref<18x18xf32, #tpu.memory_space<vmem>>, vector<1x16xf32>,
      %c0_74 = arith.constant 0 : index
      %c144 = arith.constant 144 : index
      %120 = vector.load %arg5[%c0_74, %c144] : memref<1x256xf32, #tpu.memory_space<vmem>>, vector<1x16xf32>
      %121 = vector.shape_cast %120 : vector<1x16xf32> to vector<16xf32>
      %c10 = arith.constant 10 : index
      %c1_75 = arith.constant 1 : index
      %122 = vector.load %arg7[%c10, %c1_75] : memref<18x18xf32, #tpu.memory_space<vmem>>, vector<1x16xf32>
      %123 = vector.shape_cast %122 : vector<1x16xf32> to vector<16xf32>
      %124 = vector.shape_cast %121 : vector<16xf32> to vector<1x16xf32>
      tpu.vector_store %arg7[%c10, %c1_75], %124 {strides = array<i32>} : memref<18x18xf32, #tpu.memory_space<vmem>>, vector<1x16xf32>,
      %c0_76 = arith.constant 0 : index
      %c144_77 = arith.constant 144 : index
      %125 = vector.load %arg6[%c0_76, %c144_77] : memref<1x256xf32, #tpu.memory_space<vmem>>, vector<1x16xf32>
      %126 = vector.shape_cast %125 : vector<1x16xf32> to vector<16xf32>
      %c10_78 = arith.constant 10 : index
      %c1_79 = arith.constant 1 : index
      %127 = vector.load %arg8[%c10_78, %c1_79] : memref<18x18xf32, #tpu.memory_space<vmem>>, vector<1x16xf32>
      %128 = vector.shape_cast %127 : vector<1x16xf32> to vector<16xf32>
      %129 = vector.shape_cast %126 : vector<16xf32> to vector<1x16xf32>
      tpu.vector_store %arg8[%c10_78, %c1_79], %129 {strides = array<i32>} : memref<18x18xf32, #tpu.memory_space<vmem>>, vector<1x16xf32>,
      %c0_80 = arith.constant 0 : index
      %c160 = arith.constant 160 : index
      %130 = vector.load %arg5[%c0_80, %c160] : memref<1x256xf32, #tpu.memory_space<vmem>>, vector<1x16xf32>
      %131 = vector.shape_cast %130 : vector<1x16xf32> to vector<16xf32>
      %c11 = arith.constant 11 : index
      %c1_81 = arith.constant 1 : index
      %132 = vector.load %arg7[%c11, %c1_81] : memref<18x18xf32, #tpu.memory_space<vmem>>, vector<1x16xf32>
      %133 = vector.shape_cast %132 : vector<1x16xf32> to vector<16xf32>
      %134 = vector.shape_cast %131 : vector<16xf32> to vector<1x16xf32>
      tpu.vector_store %arg7[%c11, %c1_81], %134 {strides = array<i32>} : memref<18x18xf32, #tpu.memory_space<vmem>>, vector<1x16xf32>,
      %c0_82 = arith.constant 0 : index
      %c160_83 = arith.constant 160 : index
      %135 = vector.load %arg6[%c0_82, %c160_83] : memref<1x256xf32, #tpu.memory_space<vmem>>, vector<1x16xf32>
      %136 = vector.shape_cast %135 : vector<1x16xf32> to vector<16xf32>
      %c11_84 = arith.constant 11 : index
      %c1_85 = arith.constant 1 : index
      %137 = vector.load %arg8[%c11_84, %c1_85] : memref<18x18xf32, #tpu.memory_space<vmem>>, vector<1x16xf32>
      %138 = vector.shape_cast %137 : vector<1x16xf32> to vector<16xf32>
      %139 = vector.shape_cast %136 : vector<16xf32> to vector<1x16xf32>
      tpu.vector_store %arg8[%c11_84, %c1_85], %139 {strides = array<i32>} : memref<18x18xf32, #tpu.memory_space<vmem>>, vector<1x16xf32>,
      %c0_86 = arith.constant 0 : index
      %c176 = arith.constant 176 : index
      %140 = vector.load %arg5[%c0_86, %c176] : memref<1x256xf32, #tpu.memory_space<vmem>>, vector<1x16xf32>
      %141 = vector.shape_cast %140 : vector<1x16xf32> to vector<16xf32>
      %c12 = arith.constant 12 : index
      %c1_87 = arith.constant 1 : index
      %142 = vector.load %arg7[%c12, %c1_87] : memref<18x18xf32, #tpu.memory_space<vmem>>, vector<1x16xf32>
      %143 = vector.shape_cast %142 : vector<1x16xf32> to vector<16xf32>
      %144 = vector.shape_cast %141 : vector<16xf32> to vector<1x16xf32>
      tpu.vector_store %arg7[%c12, %c1_87], %144 {strides = array<i32>} : memref<18x18xf32, #tpu.memory_space<vmem>>, vector<1x16xf32>,
      %c0_88 = arith.constant 0 : index
      %c176_89 = arith.constant 176 : index
      %145 = vector.load %arg6[%c0_88, %c176_89] : memref<1x256xf32, #tpu.memory_space<vmem>>, vector<1x16xf32>
      %146 = vector.shape_cast %145 : vector<1x16xf32> to vector<16xf32>
      %c12_90 = arith.constant 12 : index
      %c1_91 = arith.constant 1 : index
      %147 = vector.load %arg8[%c12_90, %c1_91] : memref<18x18xf32, #tpu.memory_space<vmem>>, vector<1x16xf32>
      %148 = vector.shape_cast %147 : vector<1x16xf32> to vector<16xf32>
      %149 = vector.shape_cast %146 : vector<16xf32> to vector<1x16xf32>
      tpu.vector_store %arg8[%c12_90, %c1_91], %149 {strides = array<i32>} : memref<18x18xf32, #tpu.memory_space<vmem>>, vector<1x16xf32>,
      %c0_92 = arith.constant 0 : index
      %c192 = arith.constant 192 : index
      %150 = vector.load %arg5[%c0_92, %c192] : memref<1x256xf32, #tpu.memory_space<vmem>>, vector<1x16xf32>
      %151 = vector.shape_cast %150 : vector<1x16xf32> to vector<16xf32>
      %c13 = arith.constant 13 : index
      %c1_93 = arith.constant 1 : index
      %152 = vector.load %arg7[%c13, %c1_93] : memref<18x18xf32, #tpu.memory_space<vmem>>, vector<1x16xf32>
      %153 = vector.shape_cast %152 : vector<1x16xf32> to vector<16xf32>
      %154 = vector.shape_cast %151 : vector<16xf32> to vector<1x16xf32>
      tpu.vector_store %arg7[%c13, %c1_93], %154 {strides = array<i32>} : memref<18x18xf32, #tpu.memory_space<vmem>>, vector<1x16xf32>,
      %c0_94 = arith.constant 0 : index
      %c192_95 = arith.constant 192 : index
      %155 = vector.load %arg6[%c0_94, %c192_95] : memref<1x256xf32, #tpu.memory_space<vmem>>, vector<1x16xf32>
      %156 = vector.shape_cast %155 : vector<1x16xf32> to vector<16xf32>
      %c13_96 = arith.constant 13 : index
      %c1_97 = arith.constant 1 : index
      %157 = vector.load %arg8[%c13_96, %c1_97] : memref<18x18xf32, #tpu.memory_space<vmem>>, vector<1x16xf32>
      %158 = vector.shape_cast %157 : vector<1x16xf32> to vector<16xf32>
      %159 = vector.shape_cast %156 : vector<16xf32> to vector<1x16xf32>
      tpu.vector_store %arg8[%c13_96, %c1_97], %159 {strides = array<i32>} : memref<18x18xf32, #tpu.memory_space<vmem>>, vector<1x16xf32>,
      %c0_98 = arith.constant 0 : index
      %c208 = arith.constant 208 : index
      %160 = vector.load %arg5[%c0_98, %c208] : memref<1x256xf32, #tpu.memory_space<vmem>>, vector<1x16xf32>
      %161 = vector.shape_cast %160 : vector<1x16xf32> to vector<16xf32>
      %c14 = arith.constant 14 : index
      %c1_99 = arith.constant 1 : index
      %162 = vector.load %arg7[%c14, %c1_99] : memref<18x18xf32, #tpu.memory_space<vmem>>, vector<1x16xf32>
      %163 = vector.shape_cast %162 : vector<1x16xf32> to vector<16xf32>
      %164 = vector.shape_cast %161 : vector<16xf32> to vector<1x16xf32>
      tpu.vector_store %arg7[%c14, %c1_99], %164 {strides = array<i32>} : memref<18x18xf32, #tpu.memory_space<vmem>>, vector<1x16xf32>,
      %c0_100 = arith.constant 0 : index
      %c208_101 = arith.constant 208 : index
      %165 = vector.load %arg6[%c0_100, %c208_101] : memref<1x256xf32, #tpu.memory_space<vmem>>, vector<1x16xf32>
      %166 = vector.shape_cast %165 : vector<1x16xf32> to vector<16xf32>
      %c14_102 = arith.constant 14 : index
      %c1_103 = arith.constant 1 : index
      %167 = vector.load %arg8[%c14_102, %c1_103] : memref<18x18xf32, #tpu.memory_space<vmem>>, vector<1x16xf32>
      %168 = vector.shape_cast %167 : vector<1x16xf32> to vector<16xf32>
      %169 = vector.shape_cast %166 : vector<16xf32> to vector<1x16xf32>
      tpu.vector_store %arg8[%c14_102, %c1_103], %169 {strides = array<i32>} : memref<18x18xf32, #tpu.memory_space<vmem>>, vector<1x16xf32>,
      %c0_104 = arith.constant 0 : index
      %c224 = arith.constant 224 : index
      %170 = vector.load %arg5[%c0_104, %c224] : memref<1x256xf32, #tpu.memory_space<vmem>>, vector<1x16xf32>
      %171 = vector.shape_cast %170 : vector<1x16xf32> to vector<16xf32>
      %c15 = arith.constant 15 : index
      %c1_105 = arith.constant 1 : index
      %172 = vector.load %arg7[%c15, %c1_105] : memref<18x18xf32, #tpu.memory_space<vmem>>, vector<1x16xf32>
      %173 = vector.shape_cast %172 : vector<1x16xf32> to vector<16xf32>
      %174 = vector.shape_cast %171 : vector<16xf32> to vector<1x16xf32>
      tpu.vector_store %arg7[%c15, %c1_105], %174 {strides = array<i32>} : memref<18x18xf32, #tpu.memory_space<vmem>>, vector<1x16xf32>,
      %c0_106 = arith.constant 0 : index
      %c224_107 = arith.constant 224 : index
      %175 = vector.load %arg6[%c0_106, %c224_107] : memref<1x256xf32, #tpu.memory_space<vmem>>, vector<1x16xf32>
      %176 = vector.shape_cast %175 : vector<1x16xf32> to vector<16xf32>
      %c15_108 = arith.constant 15 : index
      %c1_109 = arith.constant 1 : index
      %177 = vector.load %arg8[%c15_108, %c1_109] : memref<18x18xf32, #tpu.memory_space<vmem>>, vector<1x16xf32>
      %178 = vector.shape_cast %177 : vector<1x16xf32> to vector<16xf32>
      %179 = vector.shape_cast %176 : vector<16xf32> to vector<1x16xf32>
      tpu.vector_store %arg8[%c15_108, %c1_109], %179 {strides = array<i32>} : memref<18x18xf32, #tpu.memory_space<vmem>>, vector<1x16xf32>,
      %c0_110 = arith.constant 0 : index
      %c240 = arith.constant 240 : index
      %180 = vector.load %arg5[%c0_110, %c240] : memref<1x256xf32, #tpu.memory_space<vmem>>, vector<1x16xf32>
      %181 = vector.shape_cast %180 : vector<1x16xf32> to vector<16xf32>
      %c16_111 = arith.constant 16 : index
      %c1_112 = arith.constant 1 : index
      %182 = vector.load %arg7[%c16_111, %c1_112] : memref<18x18xf32, #tpu.memory_space<vmem>>, vector<1x16xf32>
      %183 = vector.shape_cast %182 : vector<1x16xf32> to vector<16xf32>
      %184 = vector.shape_cast %181 : vector<16xf32> to vector<1x16xf32>
      tpu.vector_store %arg7[%c16_111, %c1_112], %184 {strides = array<i32>} : memref<18x18xf32, #tpu.memory_space<vmem>>, vector<1x16xf32>,
      %c0_113 = arith.constant 0 : index
      %c240_114 = arith.constant 240 : index
      %185 = vector.load %arg6[%c0_113, %c240_114] : memref<1x256xf32, #tpu.memory_space<vmem>>, vector<1x16xf32>
      %186 = vector.shape_cast %185 : vector<1x16xf32> to vector<16xf32>
      %c16_115 = arith.constant 16 : index
      %c1_116 = arith.constant 1 : index
      %187 = vector.load %arg8[%c16_115, %c1_116] : memref<18x18xf32, #tpu.memory_space<vmem>>, vector<1x16xf32>
      %188 = vector.shape_cast %187 : vector<1x16xf32> to vector<16xf32>
      %189 = vector.shape_cast %186 : vector<16xf32> to vector<1x16xf32>
      tpu.vector_store %arg8[%c16_115, %c1_116], %189 {strides = array<i32>} : memref<18x18xf32, #tpu.memory_space<vmem>>, vector<1x16xf32>,
      %cst_117 = arith.constant 0.000000e+00 : f32
      %190 = vector.broadcast %cst_117 : f32 to vector<16x16xf32>
      %c0_118 = arith.constant 0 : index
      %191 = memref.load %arg3[%c0_118] : memref<18xf32, #tpu.memory_space<smem>>
      %c9_119 = arith.constant 9 : index
      %192 = memref.load %arg3[%c9_119] : memref<18xf32, #tpu.memory_space<smem>>
      %c0_120 = arith.constant 0 : index
      %c0_121 = arith.constant 0 : index
      %193 = vector.load %arg7[%c0_120, %c0_121] : memref<18x18xf32, #tpu.memory_space<vmem>>, vector<16x16xf32>
      %194 = vector.broadcast %191 : f32 to vector<16x16xf32>
      %195 = arith.mulf %194, %193 : vector<16x16xf32>
      %196 = arith.addf %190, %195 : vector<16x16xf32>
      %c0_122 = arith.constant 0 : index
      %c0_123 = arith.constant 0 : index
      %197 = vector.load %arg8[%c0_122, %c0_123] : memref<18x18xf32, #tpu.memory_space<vmem>>, vector<16x16xf32>
      %198 = vector.broadcast %192 : f32 to vector<16x16xf32>
      %199 = arith.mulf %198, %197 : vector<16x16xf32>
      %200 = arith.addf %196, %199 : vector<16x16xf32>
      %c1_124 = arith.constant 1 : index
      %201 = memref.load %arg3[%c1_124] : memref<18xf32, #tpu.memory_space<smem>>
      %c10_125 = arith.constant 10 : index
      %202 = memref.load %arg3[%c10_125] : memref<18xf32, #tpu.memory_space<smem>>
      %c0_126 = arith.constant 0 : index
      %c1_127 = arith.constant 1 : index
      %203 = vector.load %arg7[%c0_126, %c1_127] : memref<18x18xf32, #tpu.memory_space<vmem>>, vector<16x16xf32>
      %204 = vector.broadcast %201 : f32 to vector<16x16xf32>
      %205 = arith.mulf %204, %203 : vector<16x16xf32>
      %206 = arith.addf %200, %205 : vector<16x16xf32>
      %c0_128 = arith.constant 0 : index
      %c1_129 = arith.constant 1 : index
      %207 = vector.load %arg8[%c0_128, %c1_129] : memref<18x18xf32, #tpu.memory_space<vmem>>, vector<16x16xf32>
      %208 = vector.broadcast %202 : f32 to vector<16x16xf32>
      %209 = arith.mulf %208, %207 : vector<16x16xf32>
      %210 = arith.addf %206, %209 : vector<16x16xf32>
      %c2_130 = arith.constant 2 : index
      %211 = memref.load %arg3[%c2_130] : memref<18xf32, #tpu.memory_space<smem>>
      %c11_131 = arith.constant 11 : index
      %212 = memref.load %arg3[%c11_131] : memref<18xf32, #tpu.memory_space<smem>>
      %c0_132 = arith.constant 0 : index
      %c2_133 = arith.constant 2 : index
      %213 = vector.load %arg7[%c0_132, %c2_133] : memref<18x18xf32, #tpu.memory_space<vmem>>, vector<16x16xf32>
      %214 = vector.broadcast %211 : f32 to vector<16x16xf32>
      %215 = arith.mulf %214, %213 : vector<16x16xf32>
      %216 = arith.addf %210, %215 : vector<16x16xf32>
      %c0_134 = arith.constant 0 : index
      %c2_135 = arith.constant 2 : index
      %217 = vector.load %arg8[%c0_134, %c2_135] : memref<18x18xf32, #tpu.memory_space<vmem>>, vector<16x16xf32>
      %218 = vector.broadcast %212 : f32 to vector<16x16xf32>
      %219 = arith.mulf %218, %217 : vector<16x16xf32>
      %220 = arith.addf %216, %219 : vector<16x16xf32>
      %c3_136 = arith.constant 3 : index
      %221 = memref.load %arg3[%c3_136] : memref<18xf32, #tpu.memory_space<smem>>
      %c12_137 = arith.constant 12 : index
      %222 = memref.load %arg3[%c12_137] : memref<18xf32, #tpu.memory_space<smem>>
      %c1_138 = arith.constant 1 : index
      %c0_139 = arith.constant 0 : index
      %223 = vector.load %arg7[%c1_138, %c0_139] : memref<18x18xf32, #tpu.memory_space<vmem>>, vector<16x16xf32>
      %224 = vector.broadcast %221 : f32 to vector<16x16xf32>
      %225 = arith.mulf %224, %223 : vector<16x16xf32>
      %226 = arith.addf %220, %225 : vector<16x16xf32>
      %c1_140 = arith.constant 1 : index
      %c0_141 = arith.constant 0 : index
      %227 = vector.load %arg8[%c1_140, %c0_141] : memref<18x18xf32, #tpu.memory_space<vmem>>, vector<16x16xf32>
      %228 = vector.broadcast %222 : f32 to vector<16x16xf32>
      %229 = arith.mulf %228, %227 : vector<16x16xf32>
      %230 = arith.addf %226, %229 : vector<16x16xf32>
      %c4_142 = arith.constant 4 : index
      %231 = memref.load %arg3[%c4_142] : memref<18xf32, #tpu.memory_space<smem>>
      %c13_143 = arith.constant 13 : index
      %232 = memref.load %arg3[%c13_143] : memref<18xf32, #tpu.memory_space<smem>>
      %c1_144 = arith.constant 1 : index
      %c1_145 = arith.constant 1 : index
      %233 = vector.load %arg7[%c1_144, %c1_145] : memref<18x18xf32, #tpu.memory_space<vmem>>, vector<16x16xf32>
      %234 = vector.broadcast %231 : f32 to vector<16x16xf32>
      %235 = arith.mulf %234, %233 : vector<16x16xf32>
      %236 = arith.addf %230, %235 : vector<16x16xf32>
      %c1_146 = arith.constant 1 : index
      %c1_147 = arith.constant 1 : index
      %237 = vector.load %arg8[%c1_146, %c1_147] : memref<18x18xf32, #tpu.memory_space<vmem>>, vector<16x16xf32>
      %238 = vector.broadcast %232 : f32 to vector<16x16xf32>
      %239 = arith.mulf %238, %237 : vector<16x16xf32>
      %240 = arith.addf %236, %239 : vector<16x16xf32>
      %c5_148 = arith.constant 5 : index
      %241 = memref.load %arg3[%c5_148] : memref<18xf32, #tpu.memory_space<smem>>
      %c14_149 = arith.constant 14 : index
      %242 = memref.load %arg3[%c14_149] : memref<18xf32, #tpu.memory_space<smem>>
      %c1_150 = arith.constant 1 : index
      %c2_151 = arith.constant 2 : index
      %243 = vector.load %arg7[%c1_150, %c2_151] : memref<18x18xf32, #tpu.memory_space<vmem>>, vector<16x16xf32>
      %244 = vector.broadcast %241 : f32 to vector<16x16xf32>
      %245 = arith.mulf %244, %243 : vector<16x16xf32>
      %246 = arith.addf %240, %245 : vector<16x16xf32>
      %c1_152 = arith.constant 1 : index
      %c2_153 = arith.constant 2 : index
      %247 = vector.load %arg8[%c1_152, %c2_153] : memref<18x18xf32, #tpu.memory_space<vmem>>, vector<16x16xf32>
      %248 = vector.broadcast %242 : f32 to vector<16x16xf32>
      %249 = arith.mulf %248, %247 : vector<16x16xf32>
      %250 = arith.addf %246, %249 : vector<16x16xf32>
      %c6_154 = arith.constant 6 : index
      %251 = memref.load %arg3[%c6_154] : memref<18xf32, #tpu.memory_space<smem>>
      %c15_155 = arith.constant 15 : index
      %252 = memref.load %arg3[%c15_155] : memref<18xf32, #tpu.memory_space<smem>>
      %c2_156 = arith.constant 2 : index
      %c0_157 = arith.constant 0 : index
      %253 = vector.load %arg7[%c2_156, %c0_157] : memref<18x18xf32, #tpu.memory_space<vmem>>, vector<16x16xf32>
      %254 = vector.broadcast %251 : f32 to vector<16x16xf32>
      %255 = arith.mulf %254, %253 : vector<16x16xf32>
      %256 = arith.addf %250, %255 : vector<16x16xf32>
      %c2_158 = arith.constant 2 : index
      %c0_159 = arith.constant 0 : index
      %257 = vector.load %arg8[%c2_158, %c0_159] : memref<18x18xf32, #tpu.memory_space<vmem>>, vector<16x16xf32>
      %258 = vector.broadcast %252 : f32 to vector<16x16xf32>
      %259 = arith.mulf %258, %257 : vector<16x16xf32>
      %260 = arith.addf %256, %259 : vector<16x16xf32>
      %c7_160 = arith.constant 7 : index
      %261 = memref.load %arg3[%c7_160] : memref<18xf32, #tpu.memory_space<smem>>
      %c16_161 = arith.constant 16 : index
      %262 = memref.load %arg3[%c16_161] : memref<18xf32, #tpu.memory_space<smem>>
      %c2_162 = arith.constant 2 : index
      %c1_163 = arith.constant 1 : index
      %263 = vector.load %arg7[%c2_162, %c1_163] : memref<18x18xf32, #tpu.memory_space<vmem>>, vector<16x16xf32>
      %264 = vector.broadcast %261 : f32 to vector<16x16xf32>
      %265 = arith.mulf %264, %263 : vector<16x16xf32>
      %266 = arith.addf %260, %265 : vector<16x16xf32>
      %c2_164 = arith.constant 2 : index
      %c1_165 = arith.constant 1 : index
      %267 = vector.load %arg8[%c2_164, %c1_165] : memref<18x18xf32, #tpu.memory_space<vmem>>, vector<16x16xf32>
      %268 = vector.broadcast %262 : f32 to vector<16x16xf32>
      %269 = arith.mulf %268, %267 : vector<16x16xf32>
      %270 = arith.addf %266, %269 : vector<16x16xf32>
      %c8_166 = arith.constant 8 : index
      %271 = memref.load %arg3[%c8_166] : memref<18xf32, #tpu.memory_space<smem>>
      %c17 = arith.constant 17 : index
      %272 = memref.load %arg3[%c17] : memref<18xf32, #tpu.memory_space<smem>>
      %c2_167 = arith.constant 2 : index
      %c2_168 = arith.constant 2 : index
      %273 = vector.load %arg7[%c2_167, %c2_168] : memref<18x18xf32, #tpu.memory_space<vmem>>, vector<16x16xf32>
      %274 = vector.broadcast %271 : f32 to vector<16x16xf32>
      %275 = arith.mulf %274, %273 : vector<16x16xf32>
      %276 = arith.addf %270, %275 : vector<16x16xf32>
      %c2_169 = arith.constant 2 : index
      %c2_170 = arith.constant 2 : index
      %277 = vector.load %arg8[%c2_169, %c2_170] : memref<18x18xf32, #tpu.memory_space<vmem>>, vector<16x16xf32>
      %278 = vector.broadcast %272 : f32 to vector<16x16xf32>
      %279 = arith.mulf %278, %277 : vector<16x16xf32>
      %280 = arith.addf %276, %279 : vector<16x16xf32>
      %281 = arith.negf %280 : vector<16x16xf32>
      %282 = math.exp %281 : vector<16x16xf32>
      %cst_171 = arith.constant 1.000000e+00 : f32
      %283 = vector.broadcast %cst_171 : f32 to vector<16x16xf32>
      %284 = arith.addf %283, %282 : vector<16x16xf32>
      %285 = arith.divf %283, %284 : vector<16x16xf32>
      %286 = vector.extract_strided_slice %285 {offsets = [0, 0], sizes = [1, 16], strides = [1, 1]} : vector<16x16xf32> to vector<1x16xf32>
      %287 = vector.shape_cast %286 : vector<1x16xf32> to vector<16xf32>
      %c0_172 = arith.constant 0 : index
      %c0_173 = arith.constant 0 : index
      %c0_174 = arith.constant 0 : index
      %288 = vector.load %arg4[%c0_172, %c0_173, %c0_174] : memref<1x1x256xf32, #tpu.memory_space<vmem>>, vector<1x1x16xf32>
      %289 = vector.shape_cast %288 : vector<1x1x16xf32> to vector<16xf32>
      %290 = vector.shape_cast %287 : vector<16xf32> to vector<1x1x16xf32>
      tpu.vector_store %arg4[%c0_172, %c0_173, %c0_174], %290 {strides = array<i32>} : memref<1x1x256xf32, #tpu.memory_space<vmem>>, vector<1x1x16xf32>,
      %291 = vector.extract_strided_slice %285 {offsets = [1, 0], sizes = [1, 16], strides = [1, 1]} : vector<16x16xf32> to vector<1x16xf32>
      %292 = vector.shape_cast %291 : vector<1x16xf32> to vector<16xf32>
      %c0_175 = arith.constant 0 : index
      %c0_176 = arith.constant 0 : index
      %c16_177 = arith.constant 16 : index
      %293 = vector.load %arg4[%c0_175, %c0_176, %c16_177] : memref<1x1x256xf32, #tpu.memory_space<vmem>>, vector<1x1x16xf32>
      %294 = vector.shape_cast %293 : vector<1x1x16xf32> to vector<16xf32>
      %295 = vector.shape_cast %292 : vector<16xf32> to vector<1x1x16xf32>
      tpu.vector_store %arg4[%c0_175, %c0_176, %c16_177], %295 {strides = array<i32>} : memref<1x1x256xf32, #tpu.memory_space<vmem>>, vector<1x1x16xf32>,
      %296 = vector.extract_strided_slice %285 {offsets = [2, 0], sizes = [1, 16], strides = [1, 1]} : vector<16x16xf32> to vector<1x16xf32>
      %297 = vector.shape_cast %296 : vector<1x16xf32> to vector<16xf32>
      %c0_178 = arith.constant 0 : index
      %c0_179 = arith.constant 0 : index
      %c32_180 = arith.constant 32 : index
      %298 = vector.load %arg4[%c0_178, %c0_179, %c32_180] : memref<1x1x256xf32, #tpu.memory_space<vmem>>, vector<1x1x16xf32>
      %299 = vector.shape_cast %298 : vector<1x1x16xf32> to vector<16xf32>
      %300 = vector.shape_cast %297 : vector<16xf32> to vector<1x1x16xf32>
      tpu.vector_store %arg4[%c0_178, %c0_179, %c32_180], %300 {strides = array<i32>} : memref<1x1x256xf32, #tpu.memory_space<vmem>>, vector<1x1x16xf32>,
      %301 = vector.extract_strided_slice %285 {offsets = [3, 0], sizes = [1, 16], strides = [1, 1]} : vector<16x16xf32> to vector<1x16xf32>
      %302 = vector.shape_cast %301 : vector<1x16xf32> to vector<16xf32>
      %c0_181 = arith.constant 0 : index
      %c0_182 = arith.constant 0 : index
      %c48_183 = arith.constant 48 : index
      %303 = vector.load %arg4[%c0_181, %c0_182, %c48_183] : memref<1x1x256xf32, #tpu.memory_space<vmem>>, vector<1x1x16xf32>
      %304 = vector.shape_cast %303 : vector<1x1x16xf32> to vector<16xf32>
      %305 = vector.shape_cast %302 : vector<16xf32> to vector<1x1x16xf32>
      tpu.vector_store %arg4[%c0_181, %c0_182, %c48_183], %305 {strides = array<i32>} : memref<1x1x256xf32, #tpu.memory_space<vmem>>, vector<1x1x16xf32>,
      %306 = vector.extract_strided_slice %285 {offsets = [4, 0], sizes = [1, 16], strides = [1, 1]} : vector<16x16xf32> to vector<1x16xf32>
      %307 = vector.shape_cast %306 : vector<1x16xf32> to vector<16xf32>
      %c0_184 = arith.constant 0 : index
      %c0_185 = arith.constant 0 : index
      %c64_186 = arith.constant 64 : index
      %308 = vector.load %arg4[%c0_184, %c0_185, %c64_186] : memref<1x1x256xf32, #tpu.memory_space<vmem>>, vector<1x1x16xf32>
      %309 = vector.shape_cast %308 : vector<1x1x16xf32> to vector<16xf32>
      %310 = vector.shape_cast %307 : vector<16xf32> to vector<1x1x16xf32>
      tpu.vector_store %arg4[%c0_184, %c0_185, %c64_186], %310 {strides = array<i32>} : memref<1x1x256xf32, #tpu.memory_space<vmem>>, vector<1x1x16xf32>,
      %311 = vector.extract_strided_slice %285 {offsets = [5, 0], sizes = [1, 16], strides = [1, 1]} : vector<16x16xf32> to vector<1x16xf32>
      %312 = vector.shape_cast %311 : vector<1x16xf32> to vector<16xf32>
      %c0_187 = arith.constant 0 : index
      %c0_188 = arith.constant 0 : index
      %c80_189 = arith.constant 80 : index
      %313 = vector.load %arg4[%c0_187, %c0_188, %c80_189] : memref<1x1x256xf32, #tpu.memory_space<vmem>>, vector<1x1x16xf32>
      %314 = vector.shape_cast %313 : vector<1x1x16xf32> to vector<16xf32>
      %315 = vector.shape_cast %312 : vector<16xf32> to vector<1x1x16xf32>
      tpu.vector_store %arg4[%c0_187, %c0_188, %c80_189], %315 {strides = array<i32>} : memref<1x1x256xf32, #tpu.memory_space<vmem>>, vector<1x1x16xf32>,
      %316 = vector.extract_strided_slice %285 {offsets = [6, 0], sizes = [1, 16], strides = [1, 1]} : vector<16x16xf32> to vector<1x16xf32>
      %317 = vector.shape_cast %316 : vector<1x16xf32> to vector<16xf32>
      %c0_190 = arith.constant 0 : index
      %c0_191 = arith.constant 0 : index
      %c96_192 = arith.constant 96 : index
      %318 = vector.load %arg4[%c0_190, %c0_191, %c96_192] : memref<1x1x256xf32, #tpu.memory_space<vmem>>, vector<1x1x16xf32>
      %319 = vector.shape_cast %318 : vector<1x1x16xf32> to vector<16xf32>
      %320 = vector.shape_cast %317 : vector<16xf32> to vector<1x1x16xf32>
      tpu.vector_store %arg4[%c0_190, %c0_191, %c96_192], %320 {strides = array<i32>} : memref<1x1x256xf32, #tpu.memory_space<vmem>>, vector<1x1x16xf32>,
      %321 = vector.extract_strided_slice %285 {offsets = [7, 0], sizes = [1, 16], strides = [1, 1]} : vector<16x16xf32> to vector<1x16xf32>
      %322 = vector.shape_cast %321 : vector<1x16xf32> to vector<16xf32>
      %c0_193 = arith.constant 0 : index
      %c0_194 = arith.constant 0 : index
      %c112_195 = arith.constant 112 : index
      %323 = vector.load %arg4[%c0_193, %c0_194, %c112_195] : memref<1x1x256xf32, #tpu.memory_space<vmem>>, vector<1x1x16xf32>
      %324 = vector.shape_cast %323 : vector<1x1x16xf32> to vector<16xf32>
      %325 = vector.shape_cast %322 : vector<16xf32> to vector<1x1x16xf32>
      tpu.vector_store %arg4[%c0_193, %c0_194, %c112_195], %325 {strides = array<i32>} : memref<1x1x256xf32, #tpu.memory_space<vmem>>, vector<1x1x16xf32>,
      %326 = vector.extract_strided_slice %285 {offsets = [8, 0], sizes = [1, 16], strides = [1, 1]} : vector<16x16xf32> to vector<1x16xf32>
      %327 = vector.shape_cast %326 : vector<1x16xf32> to vector<16xf32>
      %c0_196 = arith.constant 0 : index
      %c0_197 = arith.constant 0 : index
      %c128_198 = arith.constant 128 : index
      %328 = vector.load %arg4[%c0_196, %c0_197, %c128_198] : memref<1x1x256xf32, #tpu.memory_space<vmem>>, vector<1x1x16xf32>
      %329 = vector.shape_cast %328 : vector<1x1x16xf32> to vector<16xf32>
      %330 = vector.shape_cast %327 : vector<16xf32> to vector<1x1x16xf32>
      tpu.vector_store %arg4[%c0_196, %c0_197, %c128_198], %330 {strides = array<i32>} : memref<1x1x256xf32, #tpu.memory_space<vmem>>, vector<1x1x16xf32>,
      %331 = vector.extract_strided_slice %285 {offsets = [9, 0], sizes = [1, 16], strides = [1, 1]} : vector<16x16xf32> to vector<1x16xf32>
      %332 = vector.shape_cast %331 : vector<1x16xf32> to vector<16xf32>
      %c0_199 = arith.constant 0 : index
      %c0_200 = arith.constant 0 : index
      %c144_201 = arith.constant 144 : index
      %333 = vector.load %arg4[%c0_199, %c0_200, %c144_201] : memref<1x1x256xf32, #tpu.memory_space<vmem>>, vector<1x1x16xf32>
      %334 = vector.shape_cast %333 : vector<1x1x16xf32> to vector<16xf32>
      %335 = vector.shape_cast %332 : vector<16xf32> to vector<1x1x16xf32>
      tpu.vector_store %arg4[%c0_199, %c0_200, %c144_201], %335 {strides = array<i32>} : memref<1x1x256xf32, #tpu.memory_space<vmem>>, vector<1x1x16xf32>,
      %336 = vector.extract_strided_slice %285 {offsets = [10, 0], sizes = [1, 16], strides = [1, 1]} : vector<16x16xf32> to vector<1x16xf32>
      %337 = vector.shape_cast %336 : vector<1x16xf32> to vector<16xf32>
      %c0_202 = arith.constant 0 : index
      %c0_203 = arith.constant 0 : index
      %c160_204 = arith.constant 160 : index
      %338 = vector.load %arg4[%c0_202, %c0_203, %c160_204] : memref<1x1x256xf32, #tpu.memory_space<vmem>>, vector<1x1x16xf32>
      %339 = vector.shape_cast %338 : vector<1x1x16xf32> to vector<16xf32>
      %340 = vector.shape_cast %337 : vector<16xf32> to vector<1x1x16xf32>
      tpu.vector_store %arg4[%c0_202, %c0_203, %c160_204], %340 {strides = array<i32>} : memref<1x1x256xf32, #tpu.memory_space<vmem>>, vector<1x1x16xf32>,
      %341 = vector.extract_strided_slice %285 {offsets = [11, 0], sizes = [1, 16], strides = [1, 1]} : vector<16x16xf32> to vector<1x16xf32>
      %342 = vector.shape_cast %341 : vector<1x16xf32> to vector<16xf32>
      %c0_205 = arith.constant 0 : index
      %c0_206 = arith.constant 0 : index
      %c176_207 = arith.constant 176 : index
      %343 = vector.load %arg4[%c0_205, %c0_206, %c176_207] : memref<1x1x256xf32, #tpu.memory_space<vmem>>, vector<1x1x16xf32>
      %344 = vector.shape_cast %343 : vector<1x1x16xf32> to vector<16xf32>
      %345 = vector.shape_cast %342 : vector<16xf32> to vector<1x1x16xf32>
      tpu.vector_store %arg4[%c0_205, %c0_206, %c176_207], %345 {strides = array<i32>} : memref<1x1x256xf32, #tpu.memory_space<vmem>>, vector<1x1x16xf32>,
      %346 = vector.extract_strided_slice %285 {offsets = [12, 0], sizes = [1, 16], strides = [1, 1]} : vector<16x16xf32> to vector<1x16xf32>
      %347 = vector.shape_cast %346 : vector<1x16xf32> to vector<16xf32>
      %c0_208 = arith.constant 0 : index
      %c0_209 = arith.constant 0 : index
      %c192_210 = arith.constant 192 : index
      %348 = vector.load %arg4[%c0_208, %c0_209, %c192_210] : memref<1x1x256xf32, #tpu.memory_space<vmem>>, vector<1x1x16xf32>
      %349 = vector.shape_cast %348 : vector<1x1x16xf32> to vector<16xf32>
      %350 = vector.shape_cast %347 : vector<16xf32> to vector<1x1x16xf32>
      tpu.vector_store %arg4[%c0_208, %c0_209, %c192_210], %350 {strides = array<i32>} : memref<1x1x256xf32, #tpu.memory_space<vmem>>, vector<1x1x16xf32>,
      %351 = vector.extract_strided_slice %285 {offsets = [13, 0], sizes = [1, 16], strides = [1, 1]} : vector<16x16xf32> to vector<1x16xf32>
      %352 = vector.shape_cast %351 : vector<1x16xf32> to vector<16xf32>
      %c0_211 = arith.constant 0 : index
      %c0_212 = arith.constant 0 : index
      %c208_213 = arith.constant 208 : index
      %353 = vector.load %arg4[%c0_211, %c0_212, %c208_213] : memref<1x1x256xf32, #tpu.memory_space<vmem>>, vector<1x1x16xf32>
      %354 = vector.shape_cast %353 : vector<1x1x16xf32> to vector<16xf32>
      %355 = vector.shape_cast %352 : vector<16xf32> to vector<1x1x16xf32>
      tpu.vector_store %arg4[%c0_211, %c0_212, %c208_213], %355 {strides = array<i32>} : memref<1x1x256xf32, #tpu.memory_space<vmem>>, vector<1x1x16xf32>,
      %356 = vector.extract_strided_slice %285 {offsets = [14, 0], sizes = [1, 16], strides = [1, 1]} : vector<16x16xf32> to vector<1x16xf32>
      %357 = vector.shape_cast %356 : vector<1x16xf32> to vector<16xf32>
      %c0_214 = arith.constant 0 : index
      %c0_215 = arith.constant 0 : index
      %c224_216 = arith.constant 224 : index
      %358 = vector.load %arg4[%c0_214, %c0_215, %c224_216] : memref<1x1x256xf32, #tpu.memory_space<vmem>>, vector<1x1x16xf32>
      %359 = vector.shape_cast %358 : vector<1x1x16xf32> to vector<16xf32>
      %360 = vector.shape_cast %357 : vector<16xf32> to vector<1x1x16xf32>
      tpu.vector_store %arg4[%c0_214, %c0_215, %c224_216], %360 {strides = array<i32>} : memref<1x1x256xf32, #tpu.memory_space<vmem>>, vector<1x1x16xf32>,
      %361 = vector.extract_strided_slice %285 {offsets = [15, 0], sizes = [1, 16], strides = [1, 1]} : vector<16x16xf32> to vector<1x16xf32>
      %362 = vector.shape_cast %361 : vector<1x16xf32> to vector<16xf32>
      %c0_217 = arith.constant 0 : index
      %c0_218 = arith.constant 0 : index
      %c240_219 = arith.constant 240 : index
      %363 = vector.load %arg4[%c0_217, %c0_218, %c240_219] : memref<1x1x256xf32, #tpu.memory_space<vmem>>, vector<1x1x16xf32>
      %364 = vector.shape_cast %363 : vector<1x1x16xf32> to vector<16xf32>
      %365 = vector.shape_cast %362 : vector<16xf32> to vector<1x1x16xf32>
      tpu.vector_store %arg4[%c0_217, %c0_218, %c240_219], %365 {strides = array<i32>} : memref<1x1x256xf32, #tpu.memory_space<vmem>>, vector<1x1x16xf32>,
    } else {
    }
    return
  }
  func.func @transform_0(%arg0: i32, %arg1: i32) -> (i32, i32, i32) {
    %c0_i32 = arith.constant 0 : i32
    %c0_i32_0 = arith.constant 0 : i32
    return %arg0, %arg1, %c0_i32 : i32, i32, i32
  }
  func.func @transform_1(%arg0: i32, %arg1: i32) -> i32 {
    %c0_i32 = arith.constant 0 : i32
    %c0_i32_0 = arith.constant 0 : i32
    return %c0_i32 : i32
  }
  func.func @transform_2(%arg0: i32, %arg1: i32) -> (i32, i32, i32) {
    %c0_i32 = arith.constant 0 : i32
    %c0_i32_0 = arith.constant 0 : i32
    %c0_i32_1 = arith.constant 0 : i32
    return %arg0, %c0_i32, %c0_i32_0 : i32, i32, i32
  }
}

</mosaic_0001>

<bundles_post_ra>
// kernel: tpu_custom_call.1
= control target key start
LH: loop header
LB: loop body
LE: loop exit
PB: predicated region body
PF: predicated region fallthrough
CT: control target
= control target key end

     0   :  { %7 = vsyncpa [#allocation7], 0  ;;  %s1969_s0 = inlined_call_operand.hbm [shape: f32[2,4,256], index: 0, kind: input, shape index: {}]   ;;  %s1970_s1 = inlined_call_operand.vmem [shape: f32[18], index: 1, kind: input, shape index: {}]   ;;  %s1971_s2 = inlined_call_operand.hbm [shape: f32[2,1,256], index: 2, kind: output, shape index: {}]  }
   0x1   :  { %9 = vsyncpa [#allocation7 + $0x1], 0 }
   0x2   :  { %10 = vsyncpa [#allocation9], 0 }
   0x3   :  { %11 = vsyncpa [#allocation8], 0 }
   0x4   :  { %13 = vsyncpa [#allocation8 + $0x1], 0  ;;  %s1417_s9 = smov 0   ;;  %s1419_s10 = smov 0  }
   0x5   :  { %s1421_s11 = smov 0   ;;  %s1423_s12 = smov 0  }
   0x6   :  { %s1425_s13 = smov 0   ;;  %s1427_s14 = smov 0  }
   0x7 LB: > { %s1078_s15 = sadd.s32 4294967295, %s1378_s14   ;;  %s1079_s16 = sadd.s32 4294967294, %s1378_s14   ;;  %s1378_s14 = sphi %s1427_s14, %s19_s14   ;;  %s1374_s13 = sphi %s1425_s13, %s2026_s13   ;;  %s1370_s12 = sphi %s1423_s12, %s2025_s12   ;;  %s1366_s11 = sphi %s1421_s11, %s2024_s11   ;;  %s1362_s10 = sphi %s1419_s10, %s2023_s10   ;;  %s1358_s9 = sphi %s1417_s9, %s2022_s9  }
   0x8   : > { %p53_p0 = scmp.ne.s32.totalorder %s1362_s10, %s1358_s9  ;;  %p1451_p1 = scmp.eq.s32.totalorder %s1078_s15, 0 }
   0x9   : > { %p1455_p2 = scmp.eq.s32.totalorder %s1078_s15, 1  ;;  %p104_p3 = scmp.eq.s32.totalorder %s1079_s16, 1 }
   0xa   : > { %p1461_p4 = por %p1451_p1, %p53_p0  ;;  %p1080_p5 = scmp.ge.s32.totalorder %s1378_s14, 1 }
   0xb   : > { %p1466_p6 = por %p104_p3, %p53_p0  ;;  %p111_p7 = scmp.lt.s32.totalorder %s1378_s14, 3 }
   0xc   : > { %s1979_s19 = scalar_select %p1461_p4, 1, 0 }
   0xd   : > { %s1980_s20 = scalar_select %p1466_p6, 1, 0 }
   0xe   : > { %s124_s23 = sshll.u32 %s1970_s1, 4  ;;  %p1474_p8 = pnand %p1080_p5, %p111_p7  ;;  %s125_s23 = int_to_ptr.vmem [resolvable:$true] %s124_s23 }
   0xf   : > { %s31_s26 = sadd.s32 1, %s1374_s13  ;;  %s40_s27 = sadd.s32 1, %s1366_s11 }
  0x10   : > { %p1159_p10 = pneg %p1474_p8  ;;  %p33_p12 = scmp.ge.s32.totalorder %s31_s26, 2 }
  0x11   : > { %s1251_s28 = scalar_lea.vmem %s125_s23, 16  ;;  %p1259_p7 = scmp.lt.s32.totalorder %s125_s23, %s125_s23 }
  0x12   : > { %p1483_p11 = pnand %p1159_p10, %p1451_p1  ;;  %p1252_p13 = scmp.ne.s32.totalorder %s125_s23, %s1251_s28 }
  0x13   : > { %p1260_p6 = scmp.lt.s32.totalorder %s1251_s28, %s1251_s28 }
  0x14   : > { %p1253_p0 = pneg %p1483_p11 }
  0x15   : > { %p1261_p9 = por %p1260_p6, %p1259_p7 }
  0x16   : > { %p1254_p3 = pnand %p1253_p0, %p1252_p13 }
  0x18   : > { %p1255_p5 = pneg %p1254_p3 }
  0x1a   : > { %p1262_p4 = pnand %p1261_p9, %p1255_p5 }
  0x1c   : > { %1265 = shalt.err (!%p1262_p4)
}
  0x1d   : > { %s1380_s29 = smov [#allocation10]   ;;  %s2028_s26 = smov (%p33_p12, %s31_s26), 0 }
  0x1e   : > { %1162 = dma.vmem_to_smem (!%p1483_p11), %s125_s23, 16, %s1380_s29, [#allocation9]  }
  0x1f   : > { %p47_p10 = scmp.ne.s32.totalorder %s1366_s11, %s1362_s10  ;;  %p48_p6 = scmp.eq.s32.totalorder %s1378_s14, 0 }
  0x20   : > { %s35_s30 = ssub.s32 %s1374_s13, %s2028_s26  ;;  %p1172_p4 = scmp.lt.s32.totalorder %s1378_s14, 2 }
  0x21   : > { %p38_p9 = scmp.eq.s32.totalorder %s35_s30, 0  ;;  %p49_p13 = por %p48_p6, %p47_p10 }
  0x22   : > { %p1503_p0 = por %p1455_p2, %p47_p10  ;;  %s135_s4 = sand.u32 1, %s1366_s11  }
  0x23   : > { %s1509_s5 = scalar_select %p38_p9, %s1366_s11, %s40_s27  }
  0x24   : > { %s1083_s6 = sshll.u32 %s135_s4, 3  ;;  %s1149_s7 = sshll.u32 %s1374_s13, 7 }
  0x25   : > { %s147_s16 = scalar_lea.hbm %s1969_s0, %s1149_s7  ;;  %s139_s21 = scalar_lea.vmem [#allocation6], %s1083_s6 }
  0x26   : > { %s149_s22 = sshll.u32 %s139_s21, 4  ;;  %p1515_p11 = pnand %p1172_p4, %p49_p13  ;;  %s150_s22 = int_to_ptr.vmem [resolvable:$true] %s149_s22 }
  0x27   : > { %s136_s18 = scalar_lea.sflag [#allocation7], %s135_s4  ;;  %s1279_s25 = scalar_lea.vmem %s150_s22, 128 }
  0x28   : > { %p1268_p2 = pneg %p1515_p11  ;;  %p1280_p12 = scmp.ne.s32.totalorder %s150_s22, %s1279_s25 }
  0x29   : > { %s1381_s27 = smov [#allocation6]  }
  0x2a   : > { %p1282_p3 = pnand %p1280_p12, %p1268_p2  ;;  %s1284_s28 = sshll.u32 %s1381_s27, 4  ;;  %s1285_s28 = int_to_ptr.vmem [resolvable:$false] %s1284_s28 }
  0x2b   : > { %s1286_s29 = scalar_lea.vmem %s1285_s28, 256  ;;  %p1287_p7 = scmp.lt.s32.totalorder %s150_s22, %s1285_s28 }
  0x2c   : > { %p1283_p5 = pneg %p1282_p3  ;;  %p1288_p10 = scmp.lt.s32.totalorder %s1286_s29, %s1279_s25 }
  0x2e   : > { %p1289_p6 = por %p1288_p10, %p1287_p7 }
  0x30   : > { %p1290_p9 = pnand %p1289_p6, %p1283_p5 }
  0x32   : > { %1293 = shalt.err (!%p1290_p9)
}
  0x33   : > { %1166 = dma.hbm_to_vmem [thread:$0]  (!%p1515_p11), %s147_s16, 128, %s150_s22, %s136_s18  }
  0x34   : > { %158 = sbr.rel (%p1474_p8) target bundleno = 606 (0x25e), region = 28  ;;  %s1526_s30 = sand.u32 (!%p1474_p8), 1, %s1362_s10  }
  0x35   : > { %s1087_s4 = sshll.u32 (!%p1474_p8), %s1526_s30, 3  ;;  %s161_s6 = scalar_lea.sflag (!%p1474_p8), [#allocation7], %s1526_s30 }
  0x36   : > { %s164_s7 = scalar_lea.vmem (!%p1474_p8), [#allocation6], %s1087_s4  ;;  %p1985_p4 = scmp.ne.s32.totalorder (!%p1474_p8), %s1979_s19, 0 }
  0x39   : > { %1345 = dma.done.wait (%p1985_p4), %s161_s6, 128  }
  0x3a   : > { %1347 = vsyncadd (%p1985_p4), %s161_s6, 4294967168 }
  0x3b   : > { %1349 = dma.done.wait (%p1451_p1), [#allocation9], 16  }
  0x3c   : > { %1351 = vsyncadd (%p1451_p1), [#allocation9], 4294967280 }
  0x3d   : > { %173 = sfence }
  0x3e   : > { %v190_v0 = vld [vmem:[%s164_s7] ss:$4 sm:$0x3]  ;;  %v1090_v1 = vld [vmem:[%s164_s7 + $0x1] ss:$4 sm:$0x3]  ;;  %v207_v2 = vlaneseq }
  0x3f   : > { %v193_v3 = vadd.f32 %v1090_v1, %v190_v0  ;;  %v1091_v4 = vld [vmem:[%s164_s7 + $0x2] ss:$4 sm:$0x3]  ;;  %v194_v5 = vmax.f32 %v190_v0, %v1090_v1  ;;  %v1092_v6 = vld [vmem:[%s164_s7 + $0x3] ss:$4 sm:$0x3] }
  0x40   : > { %vm230_vm0 = vcmask 146432   ;;  %v1382_v9 = vmov 0.0   ;;  %vm209_vm1 = vcmp.lt.s32.totalorder %v207_v2, 256  ;;  %s1383_s17 = smov 97   ;;  %s1384_s19 = smov 1   ;;  %vm233_vm2 = vcmask 140288  }
  0x41   : > { %v197_v7 = vadd.f32 %v1091_v4, %v193_v3  ;;  %v198_v8 = vmax.f32 %v194_v5, %v1091_v4  ;;  %231 = vst.msk [vmem:[#allocation4] sm:$0xff] %vm230_vm0, %v1382_v9  ;;  %232 = vst.msk [vmem:[#allocation4 + $0x8] sm:$0xff] %vm230_vm0, %v1382_v9  ;;  %s1385_s24 = smov 81   ;;  %s1386_s8 = smov 113   ;;  %vm247_vm3 = vcmask 131080   ;;  %vm1728_vm4 = vcmp.lt.s32.totalorder %v207_v2, 16 }
  0x42   : > { %235 = vst.msk [vmem:[#allocation5] sm:$0xff] %vm230_vm0, %v1382_v9  ;;  %236 = vst.msk [vmem:[#allocation5 + $0x8] sm:$0xff] %vm230_vm0, %v1382_v9  ;;  %s1387_s15 = smov 49   ;;  %s1388_s16 = smov 65   ;;  %vm1741_vm5 = vcmp.ge.s32.totalorder %v207_v2, 16  ;;  %vm1746_vm6 = vcmp.lt.s32.totalorder %v207_v2, 32 }
  0x43   : > { %v201_v10 = vadd.f32 %v1092_v6, %v197_v7  ;;  %v202_v11 = vmax.f32 %v198_v8, %v1092_v6  ;;  %s1389_s21 = smov 17   ;;  %s1390_s22 = smov 33   ;;  %237 = vst.msk [vmem:[#allocation5 + $0x10] sm:$0x3] %vm233_vm2, %v1382_v9  ;;  %234 = vst.msk [vmem:[#allocation4 + $0x10] sm:$0x3] %vm233_vm2, %v1382_v9 }
  0x44   : > { %s1573_s23 = sld [smem:[#allocation10 + $0x1]]  ;;  %s1391_s18 = smov 127   ;;  %vm820_vm7 = vmand %vm1741_vm5, %vm1746_vm6  ;;  %vm1755_vm8 = vcmp.ge.s32.totalorder %v207_v2, 32  ;;  %vm1760_vm9 = vcmp.lt.s32.totalorder %v207_v2, 48  ;;  %vm1781_vm11 = vcmp.ge.s32.totalorder %v207_v2, 48  ;;  %vm1786_vm12 = vcmp.lt.s32.totalorder %v207_v2, 64 }
  0x45   : > { %211 = vst.msk [vmem:[#allocation2] sm:$0x3] %vm209_vm1, %v201_v10  ;;  %212 = vst.msk [vmem:[#allocation3] sm:$0x3] %vm209_vm1, %v202_v11  ;;  %s1591_s25 = sld [smem:[#allocation10]]  ;;  %vm1791_vm13 = vcmp.ge.s32.totalorder %v207_v2, 64 }
  0x46   : > { %s1596_s27 = sld [smem:[#allocation10 + $0xa]]  ;;  %vm1973_vm10 = vmand %vm1755_vm8, %vm1760_vm9  ;;  %vm1796_vm14 = vcmp.lt.s32.totalorder %v207_v2, 80  ;;  %vm1809_vm1 = vcmp.ge.s32.totalorder %v207_v2, 80  ;;  %vm1814_vm2 = vcmp.lt.s32.totalorder %v207_v2, 96 }
  0x47   : > { %s1598_s28 = sld [smem:[#allocation10 + $0x9]]  ;;  %vm1975_vm15 = vmand %vm1781_vm11, %vm1786_vm12 }
  0x48   : > { %s1603_s29 = sld [smem:[#allocation10 + $0x2]]  ;;  %vm1974_vm0 = vmand %vm1791_vm13, %vm1796_vm14 }
  0x49   : > { %s1608_s4 = sld [smem:[#allocation10 + $0xb]]  ;;  %vm2016_vm5 = vmand %vm1755_vm8, %vm1760_vm9 }
  0x4a   : > { %v577_v26 = vstv %s1573_s23  ;;  %s1615_s6 = sld [smem:[#allocation10 + $0x4]]  ;;  %vm2018_vm8 = vmand %vm1791_vm13, %vm1796_vm14 }
  0x4b   : > { %v563_v46 = vstv %s1591_s25  ;;  %s1623_s7 = sld [smem:[#allocation10 + $0xd]]  ;;  %vm2019_vm9 = vmand %vm1809_vm1, %vm1814_vm2 }
  0x4c   : > { %v1097_v12 = vld [vmem:[#allocation2] ss:$0 sm:$0xff]  ;;  %v1111_v13 = vld [vmem:[#allocation2 + $0x1] ss:$0 sm:$0xff]  ;;  %v1094_v14 = vld [vmem:[#allocation3] ss:$0 sm:$0xff]  ;;  %v590_v45 = vstv %s1596_s27 }
  0x4d   : > { %285 = vrot.lane.b32.xlu1 %v1097_v12, %s1383_s17  ;;  %244 = vrot.lane.b32.xlu0 %v1097_v12, %s1384_s19  ;;  %v1110_v15 = vld [vmem:[#allocation3 + $0x1] ss:$0 sm:$0xff]  ;;  %v570_v47 = vstv %s1598_s28  ;;  %s1705_s23 = sld [smem:[#allocation10 + $0xc]]  ;;  %s1089_s27 = sshll.u32 %s1526_s30, 1 }
  0x4e   : > { %v605_v54 = vstv %s1603_s29  ;;  %s1714_s25 = sld [smem:[#allocation10 + $0xf]]  ;;  %s1732_s28 = scalar_lea.vmem [#allocation11], %s1089_s27 }
  0x4f   : > { %v618_v59 = vstv %s1608_s4  ;;  %s1394_s29 = smov 16   ;;  %s1395_s4 = smov 32  }
  0x50   : > { %v649_v0 = vstv %s1615_s6  ;;  %s1396_s6 = smov 64  }
  0x51   : > { %305 = vrot.lane.b32.xlu1 %v1097_v12, %s1385_s24  ;;  %265 = vrot.lane.b32.xlu0 %v1097_v12, %s1386_s8  ;;  %v662_v6 = vstv %s1623_s7  ;;  %s1397_s7 = smov 48  }
  0x55   : > { %345 = vrot.lane.b32.xlu1 %v1097_v12, %s1387_s15  ;;  %325 = vrot.lane.b32.xlu0 %v1097_v12, %s1388_s16 }
  0x59   : > { %385 = vrot.lane.b32.xlu1 %v1097_v12, %s1389_s21  ;;  %365 = vrot.lane.b32.xlu0 %v1097_v12, %s1390_s22 }
  0x5d   : > { %425 = vrot.lane.b32.xlu1 %v1111_v13, %s1386_s8  ;;  %405 = vrot.lane.b32.xlu0 %v1111_v13, %s1384_s19 }
  0x61   : > { %465 = vrot.lane.b32.xlu1 %v1111_v13, %s1385_s24  ;;  %445 = vrot.lane.b32.xlu0 %v1111_v13, %s1383_s17 }
  0x65   : > { %505 = vrot.lane.b32.xlu1 %v1111_v13, %s1387_s15  ;;  %485 = vrot.lane.b32.xlu0 %v1111_v13, %s1388_s16 }
  0x69   : > { %255 = vrot.lane.b32.xlu1 %v1094_v14, %s1384_s19  ;;  %525 = vrot.lane.b32.xlu0 %v1111_v13, %s1390_s22 }
  0x6d   : > { %295 = vrot.lane.b32.xlu1 %v1094_v14, %s1383_s17  ;;  %275 = vrot.lane.b32.xlu0 %v1094_v14, %s1386_s8 }
  0x71   : > { %335 = vrot.lane.b32.xlu1 %v1094_v14, %s1388_s16  ;;  %315 = vrot.lane.b32.xlu0 %v1094_v14, %s1385_s24 }
  0x75   : > { %375 = vrot.lane.b32.xlu1 %v1094_v14, %s1390_s22  ;;  %355 = vrot.lane.b32.xlu0 %v1094_v14, %s1387_s15 }
  0x79   : > { %415 = vrot.lane.b32.xlu1 %v1110_v15, %s1384_s19  ;;  %395 = vrot.lane.b32.xlu0 %v1094_v14, %s1389_s21  ;;  %s1631_s19 = sld [smem:[#allocation10 + $0x5]] }
  0x7d   : > { %455 = vrot.lane.b32.xlu1 %v1110_v15, %s1383_s17  ;;  %435 = vrot.lane.b32.xlu0 %v1110_v15, %s1386_s8  ;;  %s1392_s17 = smov 126   ;;  %s1646_s8 = sld [smem:[#allocation10 + $0x7]] }
  0x7f   : > { %v677_v12 = vstv %s1631_s19  ;;  %s1399_s19 = smov 96  }
  0x81   : > { %495 = vrot.lane.b32.xlu1 %v1110_v15, %s1388_s16  ;;  %475 = vrot.lane.b32.xlu0 %v1110_v15, %s1385_s24  ;;  %s1640_s24 = sld [smem:[#allocation10 + $0xe]] }
  0x82   : > { %s1665_s16 = sld [smem:[#allocation10 + $0x8]] }
  0x85   : > { %535 = vrot.lane.b32.xlu1 %v1110_v15, %s1390_s22  ;;  %515 = vrot.lane.b32.xlu0 %v1110_v15, %s1387_s15  ;;  %s1655_s15 = sld [smem:[#allocation10 + $0x10]] }
  0x86   : > { %s1703_s22 = sld [smem:[#allocation10 + $0x3]] }
  0x89   : > { %555 = vrot.lane.b32.xlu1 %v1110_v15, %s1389_s21  ;;  %545 = vrot.lane.b32.xlu0 %v1111_v13, %s1389_s21  ;;  %s1141_s21 = sld [smem:[#allocation10 + $0x11]] }
  0xbf   : > { %v286_v16 = vpop.permute.xlu1 %285  ;;  %v245_v17 = vpop.permute.xlu0 %244 }
  0xc0   : > { %288 = vst.msk [vmem:[#allocation4 + $0x3] sm:$0x1] %vm247_vm3, %v286_v16  ;;  %248 = vst.msk [vmem:[#allocation4 + $0x1] sm:$0x1] %vm247_vm3, %v245_v17  ;;  %v690_v16 = vstv %s1640_s24  ;;  %s1400_s24 = smov 112  }
  0xc3   : > { %v306_v18 = vpop.permute.xlu1 %305  ;;  %v266_v19 = vpop.permute.xlu0 %265 }
  0xc4   : > { %308 = vst.msk [vmem:[#allocation4 + $0x4] sm:$0x1] %vm247_vm3, %v306_v18  ;;  %268 = vst.msk [vmem:[#allocation4 + $0x2] sm:$0x1] %vm247_vm3, %v266_v19 }
  0xc7   : > { %v346_v20 = vpop.permute.xlu1 %345  ;;  %v326_v21 = vpop.permute.xlu0 %325 }
  0xc8   : > { %348 = vst.msk [vmem:[#allocation4 + $0x6] sm:$0x1] %vm247_vm3, %v346_v20  ;;  %328 = vst.msk [vmem:[#allocation4 + $0x5] sm:$0x1] %vm247_vm3, %v326_v21  ;;  %v721_v20 = vstv %s1646_s8  ;;  %s1150_s8 = sshll.u32 %s1370_s12, 5  ;;  %s971_s12 = scalar_lea.sflag [#allocation8], %s1526_s30 }
  0xcb   : > { %v386_v22 = vpop.permute.xlu1 %385  ;;  %v366_v23 = vpop.permute.xlu0 %365 }
  0xcc   : > { %388 = vst.msk [vmem:[#allocation4 + $0x8] sm:$0x1] %vm247_vm3, %v386_v22  ;;  %368 = vst.msk [vmem:[#allocation4 + $0x7] sm:$0x1] %vm247_vm3, %v366_v23 }
  0xcf   : > { %v426_v24 = vpop.permute.xlu1 %425  ;;  %v406_v25 = vpop.permute.xlu0 %405 }
  0xd0   : > { %428 = vst.msk [vmem:[#allocation4 + $0xa] sm:$0x1] %vm247_vm3, %v426_v24  ;;  %408 = vst.msk [vmem:[#allocation4 + $0x9] sm:$0x1] %vm247_vm3, %v406_v25  ;;  %v734_v25 = vstv %s1655_s15  ;;  %s985_s15 = sshll.u32 %s1732_s28, 4  ;;  %s986_s15 = int_to_ptr.vmem [resolvable:$true] %s985_s15 }
  0xd3   : > { %v466_v27 = vpop.permute.xlu1 %465  ;;  %v446_v28 = vpop.permute.xlu0 %445  ;;  %v561_v29 = vld [vmem:[#allocation4] sm:$0xff] }
  0xd4   : > { %468 = vst.msk [vmem:[#allocation4 + $0xc] sm:$0x1] %vm247_vm3, %v466_v27  ;;  %448 = vst.msk [vmem:[#allocation4 + $0xb] sm:$0x1] %vm247_vm3, %v446_v28  ;;  %v578_v30 = vmul.f32 %v577_v26, %v561_v29  ;;  %v564_v52 = vmul.f32 %v563_v46, %v561_v29  ;;  %v606_v58 = vmul.f32 %v605_v54, %v561_v29  ;;  %v1628_v63 = vld [vmem:[#allocation4 + $0x1] sm:$0xff]  ;;  %v749_v29 = vstv %s1665_s16 }
  0xd5   : > { %v650_v4 = vmul.f32 %v649_v0, %v1628_v63  ;;  %v678_v14 = vmul.f32 %v677_v12, %v1628_v63 }
  0xd6   : > { %582 = vrot.lane.b32.xlu0 %v578_v30, %s1391_s18 }
  0xd7   : > { %v506_v31 = vpop.permute.xlu1 %505  ;;  %v486_v32 = vpop.permute.xlu0 %485  ;;  %v1660_v19 = vld [vmem:[#allocation4 + $0x2] sm:$0xff] }
  0xd8   : > { %508 = vst.msk [vmem:[#allocation4 + $0xe] sm:$0x1] %vm247_vm3, %v506_v31  ;;  %488 = vst.msk [vmem:[#allocation4 + $0xd] sm:$0x1] %vm247_vm3, %v486_v32  ;;  %v722_v22 = vmul.f32 %v721_v20, %v1660_v19  ;;  %v750_v30 = vmul.f32 %v749_v29, %v1660_v19  ;;  %v762_v32 = vstv %s1141_s21 }
  0xdb   : > { %v256_v33 = vpop.permute.xlu1 %255  ;;  %v526_v34 = vpop.permute.xlu0 %525 }
  0xdc   : > { %258 = vst.msk [vmem:[#allocation5 + $0x1] sm:$0x1] %vm247_vm3, %v256_v33  ;;  %528 = vst.msk [vmem:[#allocation4 + $0xf] sm:$0x1] %vm247_vm3, %v526_v34 }
  0xdf   : > { %v296_v35 = vpop.permute.xlu1 %295  ;;  %v276_v36 = vpop.permute.xlu0 %275 }
  0xe0   : > { %298 = vst.msk [vmem:[#allocation5 + $0x3] sm:$0x1] %vm247_vm3, %v296_v35  ;;  %278 = vst.msk [vmem:[#allocation5 + $0x2] sm:$0x1] %vm247_vm3, %v276_v36 }
  0xe3   : > { %v336_v37 = vpop.permute.xlu1 %335  ;;  %v316_v38 = vpop.permute.xlu0 %315  ;;  %v1589_v39 = vld [vmem:[#allocation4 + $0x8] sm:$0xff] }
  0xe4   : > { %338 = vst.msk [vmem:[#allocation5 + $0x5] sm:$0x1] %vm247_vm3, %v336_v37  ;;  %318 = vst.msk [vmem:[#allocation5 + $0x4] sm:$0x1] %vm247_vm3, %v316_v38  ;;  %v579_v40 = vmul.f32 %v577_v26, %v1589_v39  ;;  %v565_v10 = vmul.f32 %v563_v46, %v1589_v39  ;;  %v607_v15 = vmul.f32 %v605_v54, %v1589_v39  ;;  %v635_v46 = vstv %s1703_s22  ;;  %s1921_s22 = scalar_lea.hbm %s1971_s2, %s1150_s8 }
  0xe6   : > { %584 = vrot.lane.b32.xlu1 %v579_v40, %s1391_s18 }
  0xe7   : > { %v376_v41 = vpop.permute.xlu1 %375  ;;  %v356_v42 = vpop.permute.xlu0 %355 }
  0xe8   : > { %378 = vst.msk [vmem:[#allocation5 + $0x7] sm:$0x1] %vm247_vm3, %v376_v41  ;;  %358 = vst.msk [vmem:[#allocation5 + $0x6] sm:$0x1] %vm247_vm3, %v356_v42 }
  0xeb   : > { %v416_v43 = vpop.permute.xlu1 %415  ;;  %v396_v44 = vpop.permute.xlu0 %395 }
  0xec   : > { %418 = vst.msk [vmem:[#allocation5 + $0x9] sm:$0x1] %vm247_vm3, %v416_v43  ;;  %398 = vst.msk [vmem:[#allocation5 + $0x8] sm:$0x1] %vm247_vm3, %v396_v44 }
  0xef   : > { %v456_v48 = vpop.permute.xlu1 %455  ;;  %v436_v49 = vpop.permute.xlu0 %435  ;;  %v568_v50 = vld [vmem:[#allocation5] sm:$0xff] }
  0xf0   : > { %458 = vst.msk [vmem:[#allocation5 + $0xb] sm:$0x1] %vm247_vm3, %v456_v48  ;;  %438 = vst.msk [vmem:[#allocation5 + $0xa] sm:$0x1] %vm247_vm3, %v436_v49  ;;  %v591_v51 = vmul.f32 %v590_v45, %v568_v50  ;;  %v571_v53 = vmul.f32 %v570_v47, %v568_v50  ;;  %v619_v62 = vmul.f32 %v618_v59, %v568_v50  ;;  %v642_v49 = vstv %s1705_s23  ;;  %s1294_s23 = scalar_lea.vmem %s986_s15, 32 }
  0xf1   : > { %v636_v50 = vmul.f32 %v635_v46, %v1628_v63  ;;  %p1295_p1 = scmp.ne.s32.totalorder %s986_s15, %s1294_s23 }
  0xf2   : > { %595 = vrot.lane.b32.xlu0 %v591_v51, %s1391_s18  ;;  %v1618_v55 = vadd.f32 %v571_v53, %v564_v52 }
  0xf3   : > { %v496_v56 = vpop.permute.xlu1 %495  ;;  %v476_v57 = vpop.permute.xlu0 %475  ;;  %v1637_v5 = vld [vmem:[#allocation5 + $0x1] sm:$0xff]  ;;  %p1296_p8 = pnand %p1295_p1, %p1503_p0 }
  0xf4   : > { %498 = vst.msk [vmem:[#allocation5 + $0xd] sm:$0x1] %vm247_vm3, %v496_v56  ;;  %478 = vst.msk [vmem:[#allocation5 + $0xc] sm:$0x1] %vm247_vm3, %v476_v57  ;;  %v663_v8 = vmul.f32 %v662_v6, %v1637_v5  ;;  %v691_v17 = vmul.f32 %v690_v16, %v1637_v5  ;;  %v1671_v24 = vld [vmem:[#allocation5 + $0x2] sm:$0xff]  ;;  %v643_v53 = vmul.f32 %v642_v49, %v1637_v5 }
  0xf5   : > { %v735_v27 = vmul.f32 %v734_v25, %v1671_v24  ;;  %v763_v33 = vmul.f32 %v762_v32, %v1671_v24  ;;  %p1297_p13 = pneg %p1296_p8 }
  0xf6   : > { %610 = vrot.lane.b32.xlu0 %v606_v58, %s1392_s17 }
  0xf7   : > { %v536_v60 = vpop.permute.xlu1 %535  ;;  %v516_v61 = vpop.permute.xlu0 %515 }
  0xf8   : > { %538 = vst.msk [vmem:[#allocation5 + $0xf] sm:$0x1] %vm247_vm3, %v536_v60  ;;  %518 = vst.msk [vmem:[#allocation5 + $0xe] sm:$0x1] %vm247_vm3, %v516_v61 }
  0xfa   : > { %623 = vrot.lane.b32.xlu0 %v619_v62, %s1392_s17 }
  0xfb   : > { %v556_v1 = vpop.permute.xlu1 %555  ;;  %v546_v3 = vpop.permute.xlu0 %545 }
  0xfc   : > { %558 = vst.msk [vmem:[#allocation5 + $0x10] sm:$0x1] %vm247_vm3, %v556_v1  ;;  %548 = vst.msk [vmem:[#allocation4 + $0x10] sm:$0x1] %vm247_vm3, %v546_v3 }
  0xfd   : > { %vm1976_vm3 = vmand %vm1809_vm1, %vm1814_vm2 }
  0xfe   : > { %654 = vrot.lane.b32.xlu0 %v650_v4, %s1391_s18 }
  0xff   : > { %v569_v7 = vld [vmem:[#allocation5 + $0x8] sm:$0xff] }
 0x100   : > { %v592_v9 = vmul.f32 %v590_v45, %v569_v7  ;;  %v572_v11 = vmul.f32 %v570_v47, %v569_v7  ;;  %v620_v18 = vmul.f32 %v618_v59, %v569_v7  ;;  %v714_v7 = vstv %s1714_s25 }
 0x102   : > { %667 = vrot.lane.b32.xlu0 %v663_v8, %s1391_s18  ;;  %597 = vrot.lane.b32.xlu1 %v592_v9, %s1391_s18  ;;  %v1650_v13 = vadd.f32 %v572_v11, %v565_v10 }
 0x103   : > { %v1663_v21 = vld [vmem:[#allocation4 + $0x9] sm:$0xff]  ;;  %v1674_v26 = vld [vmem:[#allocation5 + $0x9] sm:$0xff] }
 0x104   : > { %v651_v23 = vmul.f32 %v649_v0, %v1663_v21  ;;  %v664_v28 = vmul.f32 %v662_v6, %v1674_v26  ;;  %v679_v31 = vmul.f32 %v677_v12, %v1663_v21  ;;  %v692_v34 = vmul.f32 %v690_v16, %v1674_v26  ;;  %v1689_v35 = vld [vmem:[#allocation4 + $0xa] sm:$0xff]  ;;  %v1694_v37 = vld [vmem:[#allocation5 + $0xa] sm:$0xff] }
 0x105   : > { %v723_v36 = vmul.f32 %v721_v20, %v1689_v35  ;;  %v736_v38 = vmul.f32 %v734_v25, %v1694_v37  ;;  %v751_v39 = vmul.f32 %v749_v29, %v1689_v35  ;;  %v764_v40 = vmul.f32 %v762_v32, %v1694_v37 }
 0x106   : > { %682 = vrot.lane.b32.xlu0 %v678_v14, %s1392_s17  ;;  %612 = vrot.lane.b32.xlu1 %v607_v15, %s1392_s17  ;;  %v637_v9 = vmul.f32 %v635_v46, %v1663_v21  ;;  %v715_v15 = vmul.f32 %v714_v7, %v1671_v24 }
 0x10a   : > { %695 = vrot.lane.b32.xlu0 %v691_v17, %s1392_s17  ;;  %625 = vrot.lane.b32.xlu1 %v620_v18, %s1392_s17 }
 0x10e   : > { %726 = vrot.lane.b32.xlu0 %v722_v22, %s1391_s18  ;;  %656 = vrot.lane.b32.xlu1 %v651_v23, %s1391_s18 }
 0x112   : > { %739 = vrot.lane.b32.xlu0 %v735_v27, %s1391_s18  ;;  %669 = vrot.lane.b32.xlu1 %v664_v28, %s1391_s18 }
 0x116   : > { %754 = vrot.lane.b32.xlu0 %v750_v30, %s1392_s17  ;;  %684 = vrot.lane.b32.xlu1 %v679_v31, %s1392_s17 }
 0x11a   : > { %767 = vrot.lane.b32.xlu0 %v763_v33, %s1392_s17  ;;  %697 = vrot.lane.b32.xlu1 %v692_v34, %s1392_s17 }
 0x11e   : > { %728 = vrot.lane.b32.xlu1 %v723_v36, %s1391_s18 }
 0x122   : > { %741 = vrot.lane.b32.xlu1 %v736_v38, %s1391_s18  ;;  %s1712_s18 = sld [smem:[#allocation10 + $0x6]] }
 0x126   : > { %756 = vrot.lane.b32.xlu1 %v751_v39, %s1392_s17  ;;  %v716_v39 = vmul.f32 %v714_v7, %v1694_v37  ;;  %v797_v37 = vshrl.u32 %v207_v2, 7 }
 0x128   : > { %v707_v1 = vstv %s1712_s18  ;;  %s1401_s18 = smov [#allocation11]  }
 0x129   : > { %v708_v10 = vmul.f32 %v707_v1, %v1660_v19  ;;  %s1298_s25 = sshll.u32 %s1401_s18, 4  ;;  %s1299_s25 = int_to_ptr.vmem [resolvable:$false] %s1298_s25 }
 0x12a   : > { %769 = vrot.lane.b32.xlu1 %v764_v40, %s1392_s17  ;;  %s1398_s17 = smov 80   ;;  %s1300_s27 = scalar_lea.vmem %s1299_s25, 64 }
 0x12b   : > { %p1301_p11 = scmp.lt.s32.totalorder %s986_s15, %s1299_s25  ;;  %p1302_p2 = scmp.lt.s32.totalorder %s1300_s27, %s1294_s23 }
 0x12d   : > { %p1303_p12 = por %p1302_p2, %p1301_p11 }
 0x12f   : > { %p1304_p3 = pnand %p1303_p12, %p1297_p13 }
 0x148   : > { %v583_v41 = vpop.permute.xlu0 %582 }
 0x149   : > { %v588_v43 = vadd.f32 %v583_v41, %v1618_v55 }
 0x158   : > { %v585_v54 = vpop.permute.xlu1 %584 }
 0x159   : > { %v589_v60 = vadd.f32 %v585_v54, %v1650_v13  ;;  %v644_v13 = vmul.f32 %v642_v49, %v1674_v26  ;;  %v709_v26 = vmul.f32 %v707_v1, %v1689_v35 }
 0x164   : > { %v596_v42 = vpop.permute.xlu0 %595 }
 0x165   : > { %v601_v45 = vadd.f32 %v596_v42, %v588_v43 }
 0x168   : > { %v611_v44 = vpop.permute.xlu0 %610 }
 0x169   : > { %v616_v47 = vadd.f32 %v611_v44, %v601_v45 }
 0x16c   : > { %v624_v48 = vpop.permute.xlu0 %623 }
 0x16d   : > { %v629_v51 = vadd.f32 %v624_v48, %v616_v47 }
 0x16f   : > { %v638_v52 = vadd.f32 %v636_v50, %v629_v51  ;;  %v1393_v51 = vmov 1966171168  }
 0x170   : > { %v655_v56 = vpop.permute.xlu0 %654 }
 0x171   : > { %v645_v57 = vadd.f32 %v643_v53, %v638_v52  ;;  %v794_v52 = vunpack.c.l.s4 %v1393_v51 }
 0x173   : > { %v660_v59 = vadd.f32 %v655_v56, %v645_v57  ;;  %v795_v53 = vunpack.c.0.s8 %v794_v52 }
 0x174   : > { %v598_v58 = vpop.permute.xlu1 %597  ;;  %v668_v55 = vpop.permute.xlu0 %667 }
 0x175   : > { %v602_v63 = vadd.f32 %v598_v58, %v589_v60  ;;  %v673_v0 = vadd.f32 %v668_v55, %v660_v59  ;;  %v798_v54 = vsub.s32 %v795_v53, %v797_v37 }
 0x178   : > { %v613_v61 = vpop.permute.xlu1 %612  ;;  %v683_v62 = vpop.permute.xlu0 %682 }
 0x179   : > { %v617_v3 = vadd.f32 %v613_v61, %v602_v63  ;;  %v688_v4 = vadd.f32 %v683_v62, %v673_v0 }
 0x17c   : > { %v626_v5 = vpop.permute.xlu1 %625  ;;  %v696_v6 = vpop.permute.xlu0 %695 }
 0x17d   : > { %v630_v8 = vadd.f32 %v626_v5, %v617_v3  ;;  %v701_v11 = vadd.f32 %v696_v6, %v688_v4 }
 0x17f   : > { %v639_v12 = vadd.f32 %v637_v9, %v630_v8  ;;  %v710_v14 = vadd.f32 %v708_v10, %v701_v11 }
 0x180   : > { %v657_v16 = vpop.permute.xlu1 %656  ;;  %v727_v17 = vpop.permute.xlu0 %726 }
 0x181   : > { %v646_v18 = vadd.f32 %v644_v13, %v639_v12  ;;  %v717_v20 = vadd.f32 %v715_v15, %v710_v14 }
 0x183   : > { %v661_v25 = vadd.f32 %v657_v16, %v646_v18  ;;  %v732_v27 = vadd.f32 %v727_v17, %v717_v20 }
 0x184   : > { %v670_v22 = vpop.permute.xlu1 %669  ;;  %v740_v23 = vpop.permute.xlu0 %739 }
 0x185   : > { %v674_v21 = vadd.f32 %v670_v22, %v661_v25  ;;  %v745_v30 = vadd.f32 %v740_v23, %v732_v27 }
 0x188   : > { %v685_v28 = vpop.permute.xlu1 %684  ;;  %v755_v29 = vpop.permute.xlu0 %754 }
 0x189   : > { %v689_v19 = vadd.f32 %v685_v28, %v674_v21  ;;  %v760_v31 = vadd.f32 %v755_v29, %v745_v30 }
 0x18c   : > { %v698_v32 = vpop.permute.xlu1 %697  ;;  %v768_v33 = vpop.permute.xlu0 %767 }
 0x18d   : > { %v702_v34 = vadd.f32 %v698_v32, %v689_v19  ;;  %v773_v24 = vadd.f32 %v768_v33, %v760_v31 }
 0x18f   : > { %v711_v36 = vadd.f32 %v709_v26, %v702_v34  ;;  %v1142_v38 = vmul.f32 -1.442695, %v773_v24 }
 0x190   : > { %v729_v40 = vpop.permute.xlu1 %728 }
 0x191   : > { %1243 = vpow2.f32 %v1142_v38  ;;  %v718_v41 = vadd.f32 %v716_v39, %v711_v36 }
 0x193   : > { %v733_v43 = vadd.f32 %v729_v40, %v718_v41 }
 0x194   : > { %v742_v42 = vpop.permute.xlu1 %741 }
 0x195   : > { %v746_v45 = vadd.f32 %v742_v42, %v733_v43 }
 0x198   : > { %v757_v44 = vpop.permute.xlu1 %756 }
 0x199   : > { %v761_v46 = vadd.f32 %v757_v44, %v746_v45 }
 0x19c   : > { %v770_v47 = vpop.permute.xlu1 %769 }
 0x19d   : > { %v774_v48 = vadd.f32 %v770_v47, %v761_v46 }
 0x19e   : > { %v1244_v49 = vpop.eup %1243 }
 0x19f   : > { %v781_v50 = vadd.f32 1.0, %v1244_v49  ;;  %v1143_v35 = vmul.f32 -1.442695, %v774_v48 }
 0x1a1   : > { %1245 = vrcp.f32 %v781_v50 }
 0x1a2   : > { %1247 = vpow2.f32 %v1143_v35 }
 0x1ae   : > { %v1246_v57 = vpop.eup %1245 }
 0x1af   : > { %v1248_v58 = vpop.eup %1247  ;;  %v799_v55 = vrot.slane %v1246_v57, %v798_v54  ;;  %791 = vst.msk [vmem:[%s1732_s28] sm:$0x1] %vm1728_vm4, %v1246_v57  ;;  %v838_v63 = vcombine.high %v1246_v57, %v1246_v57 }
 0x1b0   : > { %v782_v59 = vadd.f32 1.0, %v1248_v58 }
 0x1b1   : > { %v800_v60 = vcombine.high %v799_v55, %v799_v55  ;;  %v807_v62 = vrot.slane %v799_v55, %v798_v54  ;;  %v845_v1 = vrot.slane %v838_v63, %v798_v54 }
 0x1b2   : > { %1249 = vrcp.f32 %v782_v59 }
 0x1b3   : > { %v814_v61 = vrot.slane %v800_v60, %v798_v54  ;;  %v822_v0 = vcombine.high %v807_v62, %v807_v62  ;;  %v852_v3 = vrot.slane %v845_v1, %v798_v54  ;;  %v860_v6 = vcombine.high %v845_v1, %v845_v1 }
 0x1b5   : > { %815 = vrot.lane.b32.xlu0 %v814_v61, %s1394_s29  ;;  %v830_v5 = vcombine.high %v814_v61, %v814_v61  ;;  %v867_v9 = vrot.slane %v860_v6, %v798_v54  ;;  %v875_v14 = vcombine.high %v852_v3, %v852_v3 }
 0x1b7   : > { %v883_v16 = vcombine.high %v867_v9, %v867_v9 }
 0x1b9   : > { %823 = vrot.lane.b32.xlu0 %v822_v0, %s1395_s4 }
 0x1bd   : > { %853 = vrot.lane.b32.xlu0 %v852_v3, %s1396_s6 }
 0x1bf   : > { %v1250_v4 = vpop.eup %1249 }
 0x1c0   : > { %v899_v7 = vrot.slane %v1250_v4, %v798_v54  ;;  %891 = vst.msk [vmem:[%s1732_s28 + $0x1] sm:$0x1] %vm1728_vm4, %v1250_v4  ;;  %v929_v12 = vcombine.high %v1250_v4, %v1250_v4  ;;  %vm1835_vm4 = vcmp.ge.s32.totalorder %v207_v2, 96 }
 0x1c1   : > { %831 = vrot.lane.b32.xlu0 %v830_v5, %s1397_s7 }
 0x1c2   : > { %v900_v8 = vcombine.high %v899_v7, %v899_v7  ;;  %v907_v11 = vrot.slane %v899_v7, %v798_v54  ;;  %v936_v15 = vrot.slane %v929_v12, %v798_v54 }
 0x1c4   : > { %v914_v10 = vrot.slane %v900_v8, %v798_v54  ;;  %v919_v13 = vcombine.high %v907_v11, %v907_v11  ;;  %v943_v17 = vrot.slane %v936_v15, %v798_v54  ;;  %v948_v20 = vcombine.high %v936_v15, %v936_v15 }
 0x1c5   : > { %868 = vrot.lane.b32.xlu0 %v867_v9, %s1398_s17 }
 0x1c6   : > { %915 = vrot.lane.b32.xlu1 %v914_v10, %s1394_s29  ;;  %v924_v18 = vcombine.high %v914_v10, %v914_v10  ;;  %v955_v22 = vrot.slane %v948_v20, %v798_v54  ;;  %v960_v23 = vcombine.high %v943_v17, %v943_v17 }
 0x1c8   : > { %v965_v25 = vcombine.high %v955_v22, %v955_v22 }
 0x1c9   : > { %876 = vrot.lane.b32.xlu0 %v875_v14, %s1399_s19 }
 0x1ca   : > { %920 = vrot.lane.b32.xlu1 %v919_v13, %s1395_s4 }
 0x1cd   : > { %884 = vrot.lane.b32.xlu0 %v883_v16, %s1400_s24 }
 0x1ce   : > { %944 = vrot.lane.b32.xlu1 %v943_v17, %s1396_s6 }
 0x1d2   : > { %925 = vrot.lane.b32.xlu1 %v924_v18, %s1397_s7 }
 0x1d6   : > { %956 = vrot.lane.b32.xlu1 %v955_v22, %s1398_s17 }
 0x1da   : > { %961 = vrot.lane.b32.xlu1 %v960_v23, %s1399_s19 }
 0x1de   : > { %966 = vrot.lane.b32.xlu1 %v965_v25, %s1400_s24 }
 0x227   : > { %v816_v30 = vpop.permute.xlu0 %815 }
 0x228   : > { %821 = vst.msk [vmem:[%s1732_s28] sm:$0x1] %vm820_vm7, %v816_v30 }
 0x22b   : > { %v824_v19 = vpop.permute.xlu0 %823 }
 0x22c   : > { %829 = vst.msk [vmem:[%s1732_s28] sm:$0x1] %vm1973_vm10, %v824_v19  ;;  %vm1840_vm10 = vcmp.lt.s32.totalorder %v207_v2, 112 }
 0x22f   : > { %v854_v33 = vpop.permute.xlu0 %853 }
 0x233   : > { %v832_v38 = vpop.permute.xlu0 %831 }
 0x234   : > { %837 = vst.msk [vmem:[%s1732_s28] sm:$0x1] %vm1975_vm15, %v832_v38  ;;  %vm1861_vm15 = vcmp.ge.s32.totalorder %v207_v2, 112 }
 0x235   : > { %859 = vst.msk [vmem:[%s1732_s28] sm:$0x1] %vm1974_vm0, %v854_v33  ;;  %vm881_vm0 = vmand %vm1835_vm4, %vm1840_vm10 }
 0x237   : > { %v869_v41 = vpop.permute.xlu0 %868 }
 0x238   : > { %v916_v42 = vpop.permute.xlu1 %915  ;;  %874 = vst.msk [vmem:[%s1732_s28] sm:$0x1] %vm1976_vm3, %v869_v41  ;;  %vm1866_vm3 = vcmp.lt.s32.totalorder %v207_v2, 128 }
 0x239   : > { %918 = vst.msk [vmem:[%s1732_s28 + $0x1] sm:$0x1] %vm820_vm7, %v916_v42  ;;  %vm889_vm6 = vmand %vm1861_vm15, %vm1866_vm3 }
 0x23a   : > { %vm2017_vm7 = vmand %vm1781_vm11, %vm1786_vm12 }
 0x23b   : > { %v877_v45 = vpop.permute.xlu0 %876 }
 0x23c   : > { %v921_v46 = vpop.permute.xlu1 %920  ;;  %882 = vst.msk [vmem:[%s1732_s28] sm:$0x1] %vm881_vm0, %v877_v45 }
 0x23d   : > { %923 = vst.msk [vmem:[%s1732_s28 + $0x1] sm:$0x1] %vm2016_vm5, %v921_v46 }
 0x23f   : > { %v885_v2 = vpop.permute.xlu0 %884 }
 0x240   : > { %v945_v47 = vpop.permute.xlu1 %944  ;;  %890 = vst.msk [vmem:[%s1732_s28] sm:$0x1] %vm889_vm6, %v885_v2 }
 0x244   : > { %v926_v48 = vpop.permute.xlu1 %925 }
 0x245   : > { %928 = vst.msk [vmem:[%s1732_s28 + $0x1] sm:$0x1] %vm2017_vm7, %v926_v48 }
 0x246   : > { %947 = vst.msk [vmem:[%s1732_s28 + $0x1] sm:$0x1] %vm2018_vm8, %v945_v47 }
 0x248   : > { %v957_v49 = vpop.permute.xlu1 %956 }
 0x249   : > { %959 = vst.msk [vmem:[%s1732_s28 + $0x1] sm:$0x1] %vm2019_vm9, %v957_v49 }
 0x24c   : > { %v962_v50 = vpop.permute.xlu1 %961 }
 0x24d   : > { %964 = vst.msk [vmem:[%s1732_s28 + $0x1] sm:$0x1] %vm881_vm0, %v962_v50 }
 0x250   : > { %v967_v35 = vpop.permute.xlu1 %966 }
 0x251   : > { %969 = vst.msk [vmem:[%s1732_s28 + $0x1] sm:$0x1] %vm889_vm6, %v967_v35 }
 0x252   : > { %1307 = shalt.err (!%p1304_p3)
}
 0x253   : > { %s1308_s28 = scalar_lea.hbm %s1921_s22, 32  ;;  %s1312_s4 = scalar_lea.hbm %s1971_s2, 64 }
 0x254   : > { %p1309_p5 = scmp.ne.s32.totalorder %s1921_s22, %s1308_s28  ;;  %p1313_p6 = scmp.lt.s32.totalorder %s1921_s22, %s1971_s2 }
 0x255   : > { %p1314_p9 = scmp.lt.s32.totalorder %s1312_s4, %s1308_s28 }
 0x256   : > { %p1310_p7 = pnand %p1309_p5, %p1503_p0 }
 0x257   : > { %p1315_p4 = por %p1314_p9, %p1313_p6 }
 0x258   : > { %p1311_p10 = pneg %p1310_p7 }
 0x25a   : > { %p1316_p1 = pnand %p1315_p4, %p1311_p10 }
 0x25c   : > { %1319 = shalt.err (!%p1316_p1)
}
 0x25d   : > { %1157 = dma.vmem_to_hbm [thread:$0]  (%p1503_p0), %s986_s15, 32, %s1921_s22, %s971_s12  }
 0x25e PF: > { %s997_s17 = sand.u32 1, %s1358_s9   ;;  %p2020_p8 = scmp.ne.s32.totalorder %s1980_s20, 0 }
 0x25f   : > { %p2021_p13 = scmp.ge.s32.totalorder %s1378_s14, 2  ;;  %s998_s19 = scalar_lea.sflag [#allocation8], %s997_s17 }
 0x261   : > { %p1168_p11 = pnand %p2021_p13, %p2020_p8 }
 0x263   : > { %p1169_p2 = pneg %p1168_p11 }
 0x265   : > { %1353 = dma.done.wait (%p1169_p2), %s998_s19, 32  }
 0x266   : > { %1355 = vsyncadd (%p1169_p2), %s998_s19, 4294967264  ;;  %s19_s14 = sadd.s32 1, %s1378_s14   ;;  %s2022_s9 = smov %s1362_s10 }
 0x267   : > { %p16_p12 = scmp.ge.s32.totalorder %s19_s14, 4   ;;  %s2023_s10 = smov %s1366_s11 }
 0x268   : > { %s2024_s11 = smov %s1509_s5  ;;  %s2025_s12 = smov %s1374_s13 }
 0x269   : > { %s2026_s13 = smov %s2028_s26  ;;  %18 = sbr.rel (!%p16_p12) target bundleno = 7 (0x7), region = 93 }
 0x26e   :  { %1003 = vsyncpa [#allocation7], 1 }
 0x26f   :  { %1005 = vsyncpa [#allocation7 + $0x1], 1 }
 0x270   :  { %1006 = vsyncpa [#allocation8], 1 }
 0x271   :  { %1008 = vsyncpa [#allocation8 + $0x1], 1 }
 0x272   :  { %1009 = vsyncpa [#allocation9], 1 }
 0x273   :  { %1011 = vsyncpa [#allocation9 + $0x1], 1 }

</bundles_post_ra>
